<compile_context>
chip_gen: v5e
topology: v5e:2x2
jax: 0.10.0
libtpu: 0.0.40
codegen_flags: <defaults>
</compile_context>

<pallas_src>
import functools
import math

import jax
import jax.numpy as jnp
from jax.experimental import pallas as pl
from jax.experimental.pallas import tpu as pltpu


# ----------------------------------------------------------------------------
# Conv matmul kernel: o = relu(x @ w + b), M-tiled, bf16 MXU operands, f32 accum
# ----------------------------------------------------------------------------
def _matmul_bias_relu_kernel(x_ref, w_ref, b_ref, o_ref, *, apply_relu):
    acc = jnp.dot(x_ref[...].astype(jnp.bfloat16),
                  w_ref[...].astype(jnp.bfloat16),
                  preferred_element_type=jnp.float32)
    acc = acc + b_ref[...]                      # f32 bias add / ReLU on the VPU
    if apply_relu:
        acc = jnp.maximum(acc, 0.0)
    o_ref[...] = acc.astype(o_ref.dtype)


def matmul_bias_relu(x, w, b, *, apply_relu=True, tile_m=512):
    """x: (M, K) (bf16 or f32), w: (K, N) f32, b: (N,) f32 -> (M, N) f32.

    Grid tiles M so the im2col-row DMA double-buffers against MXU compute and
    VMEM stays bounded; w/b stay resident (index_map -> (0, 0))."""
    M, K = x.shape
    K2, N = w.shape
    assert K == K2
    b2 = b.reshape(1, N).astype(jnp.float32)
    tm = M if M <= tile_m else tile_m           # tm == M or tm % 8 == 0
    grid_m = pl.cdiv(M, tm)
    kernel = functools.partial(_matmul_bias_relu_kernel, apply_relu=apply_relu)
    cost = pl.CostEstimate(
        flops=2 * M * K * N,
        transcendentals=0,
        bytes_accessed=M * K * x.dtype.itemsize + K * N * 4 + N * 4 + M * N * 4)
    return pl.pallas_call(
        kernel,
        out_shape=jax.ShapeDtypeStruct((M, N), jnp.float32),
        grid=(grid_m,),
        in_specs=[
            pl.BlockSpec((tm, K), lambda i: (i, 0)),   # M-tiled activations (pipelined)
            pl.BlockSpec((K, N), lambda i: (0, 0)),    # weights resident
            pl.BlockSpec((1, N), lambda i: (0, 0)),    # bias resident
        ],
        out_specs=pl.BlockSpec((tm, N), lambda i: (i, 0)),
        compiler_params=pltpu.CompilerParams(
            dimension_semantics=("parallel",),         # megacore-shardable on v7x
            vmem_limit_bytes=32 * 1024 * 1024),
        cost_estimate=cost,
    )(x, w, b2)


# ----------------------------------------------------------------------------
# Fused noisy head: relu(x @ (W1 + s1*E1) + b1_eff) @ (W2 + s2*E2) + b2_eff
# Single pallas_call, grid over the 512-hidden axis (fc1 N == fc2 K).
# ----------------------------------------------------------------------------
def _noisy_head_kernel(x_ref, w1_ref, e1_ref, b1_ref, w2_ref, e2_ref, b2_ref,
                       s1_ref, s2_ref, o_ref, acc_ref):
    i = pl.program_id(0)

    @pl.when(i == 0)
    def _init():
        acc_ref[...] = jnp.zeros_like(acc_ref)

    # fc1 NoisyLinear slice: noise fusion stays in f32 on the VPU (v5e-safe);
    # only the MXU operands are narrowed to bf16 (f32 accumulation).
    w1_eff = w1_ref[...] + s1_ref[...] * e1_ref[...].astype(jnp.float32)
    h = jnp.dot(x_ref[...].astype(jnp.bfloat16), w1_eff.astype(jnp.bfloat16),
                preferred_element_type=jnp.float32)
    h = jnp.maximum(h + b1_ref[...], 0.0)                       # (M, tile_n)

    # fc2 NoisyLinear: contract the same hidden slice, accumulate in f32 VMEM.
    w2_eff = w2_ref[...] + s2_ref[...] * e2_ref[...].astype(jnp.float32)
    acc_ref[...] += jnp.dot(h.astype(jnp.bfloat16), w2_eff.astype(jnp.bfloat16),
                            preferred_element_type=jnp.float32)

    @pl.when(i == pl.num_programs(0) - 1)
    def _finalize():
        o_ref[...] = (acc_ref[...] + b2_ref[...]).astype(o_ref.dtype)


def noisy_head(x, w1, ew1, b1_eff, w2p, ew2p, b2_eff_p, sigma1, sigma2, *,
               tile_n=256):
    """x: (M, K) f32; w1: (K, H) f32; ew1: (K, H) bf16; b1_eff: (H,) f32;
    w2p: (H, NP) f32 (NP = lane-dense pad of n_actions); ew2p: (H, NP) bf16;
    b2_eff_p: (NP,) f32; sigma1/sigma2: (1, 1) f32 scalars."""
    M, K = x.shape
    K1, Hdim = w1.shape
    H2, NP = w2p.shape
    assert K == K1 and Hdim == H2
    assert Hdim % tile_n == 0 and NP % 128 == 0
    nt = Hdim // tile_n
    b1_2d = b1_eff.reshape(1, Hdim).astype(jnp.float32)
    b2_2d = b2_eff_p.reshape(1, NP).astype(jnp.float32)
    cost = pl.CostEstimate(
        flops=2 * M * K * Hdim + 2 * M * Hdim * NP,
        transcendentals=0,
        bytes_accessed=(M * K * 4 + K * Hdim * (4 + 2) + Hdim * 4
                        + Hdim * NP * (4 + 2) + NP * 4 + M * NP * 4))
    return pl.pallas_call(
        _noisy_head_kernel,
        out_shape=jax.ShapeDtypeStruct((M, NP), jnp.float32),
        grid=(nt,),
        in_specs=[
            pl.BlockSpec((M, K), lambda i: (0, 0)),        # activations resident
            pl.BlockSpec((K, tile_n), lambda i: (0, i)),   # fc1 W column block (streamed)
            pl.BlockSpec((K, tile_n), lambda i: (0, i)),   # fc1 eps column block (bf16)
            pl.BlockSpec((1, tile_n), lambda i: (0, i)),   # fc1 effective-bias slice
            pl.BlockSpec((tile_n, NP), lambda i: (i, 0)),  # fc2 W row block
            pl.BlockSpec((tile_n, NP), lambda i: (i, 0)),  # fc2 eps row block (bf16)
            pl.BlockSpec((1, NP), lambda i: (0, 0)),       # fc2 effective bias (resident)
            pl.BlockSpec((1, 1), lambda i: (0, 0)),        # sigma1 scalar (see init note)
            pl.BlockSpec((1, 1), lambda i: (0, 0)),        # sigma2 scalar
        ],
        out_specs=pl.BlockSpec((M, NP), lambda i: (0, 0)),  # lane-dense, written last step
        scratch_shapes=[pltpu.VMEM((M, NP), jnp.float32)],  # fc2 accumulator
        compiler_params=pltpu.CompilerParams(
            dimension_semantics=("arbitrary",),             # accumulator carried over grid
            vmem_limit_bytes=32 * 1024 * 1024),
        cost_estimate=cost,
    )(x, w1, ew1, b1_2d, w2p, ew2p, b2_2d, sigma1, sigma2)


# ----------------------------------------------------------------------------
# Conv via im2col (glue) + Pallas matmul kernel (hot path)
# ----------------------------------------------------------------------------
def conv2d_relu(x, w, b, stride):
    """x: (B, H, W, Cin); w: (KH, KW, Cin, Cout); b: (Cout,). Valid padding."""
    B, H, W, Cin = x.shape
    KH, KW, _, Cout = w.shape
    Hout = (H - KH) // stride + 1
    Wout = (W - KW) // stride + 1
    # TODO(synk): patch extraction stays in plain JAX (materializes KH*KW shifted
    # copies in HBM); an in-kernel strided-window gather (or lax.conv) would avoid
    # the expansion, but has no clean low-risk BlockSpec expression here.
    patches = []
    for i in range(KH):
        for j in range(KW):
            patches.append(
                x[:, i:i + Hout * stride:stride, j:j + Wout * stride:stride, :]
            )  # (B, Hout, Wout, Cin)
    cols = jnp.stack(patches, axis=3)                      # (B, Hout, Wout, KH*KW, Cin)
    cols = cols.reshape(B * Hout * Wout, KH * KW * Cin)
    cols = cols.astype(jnp.bfloat16)                       # halve im2col HBM traffic
    wmat = w.reshape(KH * KW * Cin, Cout)                  # (kh, kw, cin) row order
    out = matmul_bias_relu(cols, wmat, b, apply_relu=True)
    return out.reshape(B, Hout, Wout, Cout)


# ----------------------------------------------------------------------------
# Parameter init (deterministic, synthetic) and forward
# ----------------------------------------------------------------------------
def _conv_out_spatial(h, w):
    h1, w1 = (h - 8) // 4 + 1, (w - 8) // 4 + 1
    h2, w2 = (h1 - 4) // 2 + 1, (w1 - 4) // 2 + 1
    h3, w3 = h2 - 3 + 1, w2 - 3 + 1
    return h3, w3


def init_params(key, inshape, outshape, sigma_init=0.017):
    C, H, W = inshape[1], inshape[2], inshape[3]
    keys = jax.random.split(key, 10)

    def u(k, shape, bound):
        return jax.random.uniform(k, shape, jnp.float32, -bound, bound)

    p = {}
    b1 = 1.0 / math.sqrt(C * 8 * 8)
    p["w1"] = u(keys[0], (8, 8, C, 32), b1)
    p["b1"] = u(keys[1], (32,), b1)
    b2 = 1.0 / math.sqrt(32 * 4 * 4)
    p["w2"] = u(keys[2], (4, 4, 32, 64), b2)
    p["b2"] = u(keys[3], (64,), b2)
    b3 = 1.0 / math.sqrt(64 * 3 * 3)
    p["w3"] = u(keys[4], (3, 3, 64, 64), b3)
    p["b3"] = u(keys[5], (64,), b3)

    h3, w3 = _conv_out_spatial(H, W)
    conv_out = 64 * h3 * w3

    # NoisyLinear.reset_parameters: U(-sqrt(3/in), sqrt(3/in)).
    # fc1 weight is stored (in, out) with input rows in NHWC-flatten order so the
    # conv output is flattened directly (the runtime NHWC->NCHW transpose is gone);
    # this is a fixed permutation of torch's NCHW-flatten layout.
    std1 = math.sqrt(3.0 / conv_out)
    p["fc1_w"] = u(keys[6], (conv_out, 512), std1)
    p["fc1_b"] = u(keys[7], (512,), std1)
    std2 = math.sqrt(3.0 / 512)
    p["fc2_w"] = u(keys[8], (512, outshape), std2)
    p["fc2_b"] = u(keys[9], (outshape,), std2)

    # sigma_weight is the constant sigma_init at init, so it is passed to the kernel
    # as a (1,1) scalar instead of streaming a full (K,N) matrix.  If sigma becomes a
    # trained per-element tensor, the matrix must be streamed instead.
    p["fc1_sigma_w"] = jnp.full((1, 1), sigma_init, jnp.float32)
    p["fc2_sigma_w"] = jnp.full((1, 1), sigma_init, jnp.float32)
    p["fc1_sigma_b"] = jnp.full((512,), sigma_init, jnp.float32)
    p["fc2_sigma_b"] = jnp.full((outshape,), sigma_init, jnp.float32)
    return p


def noisy_dqn_forward(params, x_nchw, noise_key):
    # conv stack: Conv(8,4) -> ReLU -> Conv(4,2) -> ReLU -> Conv(3,1) -> ReLU -> Flatten
    x = jnp.transpose(x_nchw, (0, 2, 3, 1)).astype(jnp.float32)   # NCHW -> NHWC once
    x = conv2d_relu(x, params["w1"], params["b1"], 4)
    x = conv2d_relu(x, params["w2"], params["b2"], 2)
    x = conv2d_relu(x, params["w3"], params["b3"], 1)
    B = x.shape[0]
    x = x.reshape(B, -1)   # NHWC flatten (fc1_w rows stored in the same order)

    n_out = params["fc2_w"].shape[1]
    npad = ((n_out + 127) // 128) * 128    # lane-dense fc2 output width

    # NoisyLinear epsilon buffers are resampled N(0,1) every forward (torch .normal_()).
    # eps_w is streamed in bf16 (it only feeds a bf16 MXU operand).
    # TODO(synk): move eps generation in-kernel (pltpu.prng_seed/prng_random_bits) to
    # drop this HBM stream entirely; kept in the wrapper so the jax.random noise
    # stream stays reproducible (see review note on bit-exactness).
    k1, k2, k3, k4 = jax.random.split(noise_key, 4)
    ew1 = jax.random.normal(k1, params["fc1_w"].shape, jnp.float32).astype(jnp.bfloat16)
    eb1 = jax.random.normal(k2, params["fc1_b"].shape, jnp.float32)
    ew2 = jax.random.normal(k3, params["fc2_w"].shape, jnp.float32).astype(jnp.bfloat16)
    eb2 = jax.random.normal(k4, params["fc2_b"].shape, jnp.float32)

    # Effective (noisy) biases are tiny vectors; fuse them here.
    b1_eff = params["fc1_b"] + params["fc1_sigma_b"] * eb1
    b2_eff = params["fc2_b"] + params["fc2_sigma_b"] * eb2

    # Zero-pad fc2 to a lane-dense 128-wide output; slice back afterwards.
    pad = npad - n_out
    w2p = jnp.pad(params["fc2_w"], ((0, 0), (0, pad)))
    e2p = jnp.pad(ew2, ((0, 0), (0, pad)))
    b2p = jnp.pad(b2_eff, (0, pad))

    out = noisy_head(x, params["fc1_w"], ew1, b1_eff, w2p, e2p, b2p,
                     params["fc1_sigma_w"], params["fc2_sigma_w"])
    return out[:, :n_out]


if __name__ == "__main__":
    key = jax.random.PRNGKey(0)
    pkey, xkey, nkey = jax.random.split(key, 3)

    # Small but valid for the 8/4 -> 4/2 -> 3/1 conv stack: 36 -> 8 -> 3 -> 1
    inshape = (2, 4, 36, 36)     # (B, C, H, W), PyTorch NCHW
    n_actions = 6

    params = init_params(pkey, inshape, n_actions)
    x = jax.random.normal(xkey, inshape, jnp.float32)

    fwd = jax.jit(noisy_dqn_forward)
    out = jax.block_until_ready(fwd(params, x, nkey))
    assert out.shape == (inshape[0], n_actions)
    assert bool(jnp.all(jnp.isfinite(out)))
    print("KERNEL_OK")
</pallas_src>

<mosaic_0001>
module attributes {stable_mosaic.version = 11 : i64} {
  func.func @_matmul_bias_relu_kernel(%arg0: i32, %arg1: memref<128x256xbf16, #tpu.memory_space<vmem>>, %arg2: memref<256x32xf32, #tpu.memory_space<vmem>>, %arg3: memref<1x32xf32, #tpu.memory_space<vmem>>, %arg4: memref<128x32xf32, #tpu.memory_space<vmem>>) attributes {dimension_semantics = [#tpu.dimension_semantics<parallel>], iteration_bounds = array<i64: 1>, scalar_prefetch = 0 : i64, scratch_operands = 0 : i64, tpu.core_type = #tpu.core_type<tc>, window_params = [{transform_indices = @transform_0, window_bounds = array<i64: 128, 256>}, {pipeline_mode = #tpu.pipeline_mode<synchronous>, transform_indices = @transform_1, window_bounds = array<i64: 256, 32>}, {pipeline_mode = #tpu.pipeline_mode<synchronous>, transform_indices = @transform_2, window_bounds = array<i64: 1, 32>}, {transform_indices = @transform_3, window_bounds = array<i64: 128, 32>}]} {
    %c0 = arith.constant 0 : index
    %c0_0 = arith.constant 0 : index
    %0 = vector.load %arg1[%c0, %c0_0] : memref<128x256xbf16, #tpu.memory_space<vmem>>, vector<128x256xbf16>
    %c0_1 = arith.constant 0 : index
    %c0_2 = arith.constant 0 : index
    %1 = vector.load %arg2[%c0_1, %c0_2] : memref<256x32xf32, #tpu.memory_space<vmem>>, vector<256x32xf32>
    %2 = arith.truncf %1 : vector<256x32xf32> to vector<256x32xbf16>
    %cst = arith.constant dense<0.000000e+00> : vector<128x32xf32>
    %3 = tpu.matmul %0, %2, %cst {dimension_numbers = #tpu.dot_dimension_numbers<[1], [0], [0], [1], [0, 0, 1, 1], [], []>} : vector<128x256xbf16>, vector<256x32xbf16>, vector<128x32xf32> -> vector<128x32xf32>
    %c0_3 = arith.constant 0 : index
    %c0_4 = arith.constant 0 : index
    %4 = vector.load %arg3[%c0_3, %c0_4] : memref<1x32xf32, #tpu.memory_space<vmem>>, vector<1x32xf32>
    %5 = vector.broadcast %4 : vector<1x32xf32> to vector<128x32xf32>
    %6 = arith.addf %3, %5 : vector<128x32xf32>
    %cst_5 = arith.constant 0.000000e+00 : f32
    %7 = vector.broadcast %cst_5 : f32 to vector<128x32xf32>
    %8 = arith.maximumf %6, %7 : vector<128x32xf32>
    %c0_6 = arith.constant 0 : index
    %c0_7 = arith.constant 0 : index
    %9 = vector.load %arg4[%c0_6, %c0_7] : memref<128x32xf32, #tpu.memory_space<vmem>>, vector<128x32xf32>
    tpu.vector_store %arg4[%c0_6, %c0_7], %8 {strides = array<i32>} : memref<128x32xf32, #tpu.memory_space<vmem>>, vector<128x32xf32>,
    return
  }
  func.func @transform_0(%arg0: i32) -> (i32, i32) {
    %c0_i32 = arith.constant 0 : i32
    %c0_i32_0 = arith.constant 0 : i32
    return %arg0, %c0_i32 : i32, i32
  }
  func.func @transform_1(%arg0: i32) -> (i32, i32) {
    %c0_i32 = arith.constant 0 : i32
    %c0_i32_0 = arith.constant 0 : i32
    %c0_i32_1 = arith.constant 0 : i32
    return %c0_i32, %c0_i32_0 : i32, i32
  }
  func.func @transform_2(%arg0: i32) -> (i32, i32) {
    %c0_i32 = arith.constant 0 : i32
    %c0_i32_0 = arith.constant 0 : i32
    %c0_i32_1 = arith.constant 0 : i32
    return %c0_i32, %c0_i32_0 : i32, i32
  }
  func.func @transform_3(%arg0: i32) -> (i32, i32) {
    %c0_i32 = arith.constant 0 : i32
    %c0_i32_0 = arith.constant 0 : i32
    return %arg0, %c0_i32 : i32, i32
  }
}

module attributes {stable_mosaic.version = 11 : i64} {
  func.func @_matmul_bias_relu_kernel(%arg0: i32, %arg1: memref<18x512xbf16, #tpu.memory_space<vmem>>, %arg2: memref<512x64xf32, #tpu.memory_space<vmem>>, %arg3: memref<1x64xf32, #tpu.memory_space<vmem>>, %arg4: memref<18x64xf32, #tpu.memory_space<vmem>>) attributes {dimension_semantics = [#tpu.dimension_semantics<parallel>], iteration_bounds = array<i64: 1>, scalar_prefetch = 0 : i64, scratch_operands = 0 : i64, tpu.core_type = #tpu.core_type<tc>, window_params = [{transform_indices = @transform_0, window_bounds = array<i64: 18, 512>}, {pipeline_mode = #tpu.pipeline_mode<synchronous>, transform_indices = @transform_1, window_bounds = array<i64: 512, 64>}, {pipeline_mode = #tpu.pipeline_mode<synchronous>, transform_indices = @transform_2, window_bounds = array<i64: 1, 64>}, {transform_indices = @transform_3, window_bounds = array<i64: 18, 64>}]} {
    %c0 = arith.constant 0 : index
    %c0_0 = arith.constant 0 : index
    %0 = vector.load %arg1[%c0, %c0_0] : memref<18x512xbf16, #tpu.memory_space<vmem>>, vector<18x512xbf16>
    %c0_1 = arith.constant 0 : index
    %c0_2 = arith.constant 0 : index
    %1 = vector.load %arg2[%c0_1, %c0_2] : memref<512x64xf32, #tpu.memory_space<vmem>>, vector<512x64xf32>
    %2 = arith.truncf %1 : vector<512x64xf32> to vector<512x64xbf16>
    %cst = arith.constant dense<0.000000e+00> : vector<18x64xf32>
    %3 = tpu.matmul %0, %2, %cst {dimension_numbers = #tpu.dot_dimension_numbers<[1], [0], [0], [1], [0, 0, 1, 1], [], []>} : vector<18x512xbf16>, vector<512x64xbf16>, vector<18x64xf32> -> vector<18x64xf32>
    %c0_3 = arith.constant 0 : index
    %c0_4 = arith.constant 0 : index
    %4 = vector.load %arg3[%c0_3, %c0_4] : memref<1x64xf32, #tpu.memory_space<vmem>>, vector<1x64xf32>
    %5 = vector.broadcast %4 : vector<1x64xf32> to vector<18x64xf32>
    %6 = arith.addf %3, %5 : vector<18x64xf32>
    %cst_5 = arith.constant 0.000000e+00 : f32
    %7 = vector.broadcast %cst_5 : f32 to vector<18x64xf32>
    %8 = arith.maximumf %6, %7 : vector<18x64xf32>
    %c0_6 = arith.constant 0 : index
    %c0_7 = arith.constant 0 : index
    %9 = vector.load %arg4[%c0_6, %c0_7] : memref<18x64xf32, #tpu.memory_space<vmem>>, vector<18x64xf32>
    tpu.vector_store %arg4[%c0_6, %c0_7], %8 {strides = array<i32>} : memref<18x64xf32, #tpu.memory_space<vmem>>, vector<18x64xf32>,
    return
  }
  func.func @transform_0(%arg0: i32) -> (i32, i32) {
    %c0_i32 = arith.constant 0 : i32
    %c0_i32_0 = arith.constant 0 : i32
    return %arg0, %c0_i32 : i32, i32
  }
  func.func @transform_1(%arg0: i32) -> (i32, i32) {
    %c0_i32 = arith.constant 0 : i32
    %c0_i32_0 = arith.constant 0 : i32
    %c0_i32_1 = arith.constant 0 : i32
    return %c0_i32, %c0_i32_0 : i32, i32
  }
  func.func @transform_2(%arg0: i32) -> (i32, i32) {
    %c0_i32 = arith.constant 0 : i32
    %c0_i32_0 = arith.constant 0 : i32
    %c0_i32_1 = arith.constant 0 : i32
    return %c0_i32, %c0_i32_0 : i32, i32
  }
  func.func @transform_3(%arg0: i32) -> (i32, i32) {
    %c0_i32 = arith.constant 0 : i32
    %c0_i32_0 = arith.constant 0 : i32
    return %arg0, %c0_i32 : i32, i32
  }
}

module attributes {stable_mosaic.version = 11 : i64} {
  func.func @_matmul_bias_relu_kernel(%arg0: i32, %arg1: memref<2x576xbf16, #tpu.memory_space<vmem>>, %arg2: memref<576x64xf32, #tpu.memory_space<vmem>>, %arg3: memref<1x64xf32, #tpu.memory_space<vmem>>, %arg4: memref<2x64xf32, #tpu.memory_space<vmem>>) attributes {dimension_semantics = [#tpu.dimension_semantics<parallel>], iteration_bounds = array<i64: 1>, scalar_prefetch = 0 : i64, scratch_operands = 0 : i64, tpu.core_type = #tpu.core_type<tc>, window_params = [{transform_indices = @transform_0, window_bounds = array<i64: 2, 576>}, {pipeline_mode = #tpu.pipeline_mode<synchronous>, transform_indices = @transform_1, window_bounds = array<i64: 576, 64>}, {pipeline_mode = #tpu.pipeline_mode<synchronous>, transform_indices = @transform_2, window_bounds = array<i64: 1, 64>}, {transform_indices = @transform_3, window_bounds = array<i64: 2, 64>}]} {
    %c0 = arith.constant 0 : index
    %c0_0 = arith.constant 0 : index
    %0 = vector.load %arg1[%c0, %c0_0] : memref<2x576xbf16, #tpu.memory_space<vmem>>, vector<2x576xbf16>
    %c0_1 = arith.constant 0 : index
    %c0_2 = arith.constant 0 : index
    %1 = vector.load %arg2[%c0_1, %c0_2] : memref<576x64xf32, #tpu.memory_space<vmem>>, vector<576x64xf32>
    %2 = arith.truncf %1 : vector<576x64xf32> to vector<576x64xbf16>
    %cst = arith.constant dense<0.000000e+00> : vector<2x64xf32>
    %3 = tpu.matmul %0, %2, %cst {dimension_numbers = #tpu.dot_dimension_numbers<[1], [0], [0], [1], [0, 0, 1, 1], [], []>} : vector<2x576xbf16>, vector<576x64xbf16>, vector<2x64xf32> -> vector<2x64xf32>
    %c0_3 = arith.constant 0 : index
    %c0_4 = arith.constant 0 : index
    %4 = vector.load %arg3[%c0_3, %c0_4] : memref<1x64xf32, #tpu.memory_space<vmem>>, vector<1x64xf32>
    %5 = vector.broadcast %4 : vector<1x64xf32> to vector<2x64xf32>
    %6 = arith.addf %3, %5 : vector<2x64xf32>
    %cst_5 = arith.constant 0.000000e+00 : f32
    %7 = vector.broadcast %cst_5 : f32 to vector<2x64xf32>
    %8 = arith.maximumf %6, %7 : vector<2x64xf32>
    %c0_6 = arith.constant 0 : index
    %c0_7 = arith.constant 0 : index
    %9 = vector.load %arg4[%c0_6, %c0_7] : memref<2x64xf32, #tpu.memory_space<vmem>>, vector<2x64xf32>
    tpu.vector_store %arg4[%c0_6, %c0_7], %8 {strides = array<i32>} : memref<2x64xf32, #tpu.memory_space<vmem>>, vector<2x64xf32>,
    return
  }
  func.func @transform_0(%arg0: i32) -> (i32, i32) {
    %c0_i32 = arith.constant 0 : i32
    %c0_i32_0 = arith.constant 0 : i32
    return %arg0, %c0_i32 : i32, i32
  }
  func.func @transform_1(%arg0: i32) -> (i32, i32) {
    %c0_i32 = arith.constant 0 : i32
    %c0_i32_0 = arith.constant 0 : i32
    %c0_i32_1 = arith.constant 0 : i32
    return %c0_i32, %c0_i32_0 : i32, i32
  }
  func.func @transform_2(%arg0: i32) -> (i32, i32) {
    %c0_i32 = arith.constant 0 : i32
    %c0_i32_0 = arith.constant 0 : i32
    %c0_i32_1 = arith.constant 0 : i32
    return %c0_i32, %c0_i32_0 : i32, i32
  }
  func.func @transform_3(%arg0: i32) -> (i32, i32) {
    %c0_i32 = arith.constant 0 : i32
    %c0_i32_0 = arith.constant 0 : i32
    return %arg0, %c0_i32 : i32, i32
  }
}

module attributes {stable_mosaic.version = 11 : i64} {
  func.func @_noisy_head_kernel(%arg0: i32, %arg1: memref<2x64xf32, #tpu.memory_space<vmem>>, %arg2: memref<64x256xf32, #tpu.memory_space<vmem>>, %arg3: memref<64x256xbf16, #tpu.memory_space<vmem>>, %arg4: memref<1x256xf32, #tpu.memory_space<vmem>>, %arg5: memref<256x128xf32, #tpu.memory_space<vmem>>, %arg6: memref<256x128xbf16, #tpu.memory_space<vmem>>, %arg7: memref<1x128xf32, #tpu.memory_space<vmem>>, %arg8: memref<1x1xf32, #tpu.memory_space<vmem>>, %arg9: memref<1x1xf32, #tpu.memory_space<vmem>>, %arg10: memref<2x128xf32, #tpu.memory_space<vmem>>, %arg11: memref<2x128xf32, #tpu.memory_space<vmem>>) attributes {dimension_semantics = [#tpu.dimension_semantics<arbitrary>], iteration_bounds = array<i64: 2>, scalar_prefetch = 0 : i64, scratch_operands = 1 : i64, tpu.core_type = #tpu.core_type<tc>, window_params = [{pipeline_mode = #tpu.pipeline_mode<synchronous>, transform_indices = @transform_0, window_bounds = array<i64: 2, 64>}, {transform_indices = @transform_1, window_bounds = array<i64: 64, 256>}, {transform_indices = @transform_2, window_bounds = array<i64: 64, 256>}, {transform_indices = @transform_3, window_bounds = array<i64: 1, 256>}, {transform_indices = @transform_4, window_bounds = array<i64: 256, 128>}, {transform_indices = @transform_5, window_bounds = array<i64: 256, 128>}, {pipeline_mode = #tpu.pipeline_mode<synchronous>, transform_indices = @transform_6, window_bounds = array<i64: 1, 128>}, {pipeline_mode = #tpu.pipeline_mode<synchronous>, transform_indices = @transform_7, window_bounds = array<i64: 1, 1>}, {pipeline_mode = #tpu.pipeline_mode<synchronous>, transform_indices = @transform_8, window_bounds = array<i64: 1, 1>}, {pipeline_mode = #tpu.pipeline_mode<synchronous>, transform_indices = @transform_9, window_bounds = array<i64: 2, 128>}]} {
    %c0_i32 = arith.constant 0 : i32
    %0 = arith.cmpi eq, %arg0, %c0_i32 : i32
    %1 = arith.extui %0 : i1 to i32
    %c0_i32_0 = arith.constant 0 : i32
    %2 = arith.cmpi ne, %1, %c0_i32_0 : i32
    scf.if %2 {
      %cst_23 = arith.constant 0.000000e+00 : f32
      %35 = vector.broadcast %cst_23 : f32 to vector<2x128xf32>
      %c0_24 = arith.constant 0 : index
      %c0_25 = arith.constant 0 : index
      %36 = vector.load %arg11[%c0_24, %c0_25] : memref<2x128xf32, #tpu.memory_space<vmem>>, vector<2x128xf32>
      tpu.vector_store %arg11[%c0_24, %c0_25], %35 {strides = array<i32>} : memref<2x128xf32, #tpu.memory_space<vmem>>, vector<2x128xf32>,
    } else {
    }
    %c0 = arith.constant 0 : index
    %c0_1 = arith.constant 0 : index
    %3 = vector.load %arg2[%c0, %c0_1] : memref<64x256xf32, #tpu.memory_space<vmem>>, vector<64x256xf32>
    %c0_2 = arith.constant 0 : index
    %c0_3 = arith.constant 0 : index
    %4 = vector.load %arg8[%c0_2, %c0_3] : memref<1x1xf32, #tpu.memory_space<vmem>>, vector<1x1xf32>
    %c0_4 = arith.constant 0 : index
    %c0_5 = arith.constant 0 : index
    %5 = vector.load %arg3[%c0_4, %c0_5] : memref<64x256xbf16, #tpu.memory_space<vmem>>, vector<64x256xbf16>
    %6 = arith.extf %5 : vector<64x256xbf16> to vector<64x256xf32>
    %7 = vector.broadcast %4 : vector<1x1xf32> to vector<64x256xf32>
    %8 = arith.mulf %7, %6 : vector<64x256xf32>
    %9 = arith.addf %3, %8 : vector<64x256xf32>
    %c0_6 = arith.constant 0 : index
    %c0_7 = arith.constant 0 : index
    %10 = vector.load %arg1[%c0_6, %c0_7] : memref<2x64xf32, #tpu.memory_space<vmem>>, vector<2x64xf32>
    %11 = arith.truncf %10 : vector<2x64xf32> to vector<2x64xbf16>
    %12 = arith.truncf %9 : vector<64x256xf32> to vector<64x256xbf16>
    %cst = arith.constant dense<0.000000e+00> : vector<2x256xf32>
    %13 = tpu.matmul %11, %12, %cst {dimension_numbers = #tpu.dot_dimension_numbers<[1], [0], [0], [1], [0, 0, 1, 1], [], []>} : vector<2x64xbf16>, vector<64x256xbf16>, vector<2x256xf32> -> vector<2x256xf32>
    %c0_8 = arith.constant 0 : index
    %c0_9 = arith.constant 0 : index
    %14 = vector.load %arg4[%c0_8, %c0_9] : memref<1x256xf32, #tpu.memory_space<vmem>>, vector<1x256xf32>
    %15 = vector.broadcast %14 : vector<1x256xf32> to vector<2x256xf32>
    %16 = arith.addf %13, %15 : vector<2x256xf32>
    %cst_10 = arith.constant 0.000000e+00 : f32
    %17 = vector.broadcast %cst_10 : f32 to vector<2x256xf32>
    %18 = arith.maximumf %16, %17 : vector<2x256xf32>
    %c0_11 = arith.constant 0 : index
    %c0_12 = arith.constant 0 : index
    %19 = vector.load %arg5[%c0_11, %c0_12] : memref<256x128xf32, #tpu.memory_space<vmem>>, vector<256x128xf32>
    %c0_13 = arith.constant 0 : index
    %c0_14 = arith.constant 0 : index
    %20 = vector.load %arg9[%c0_13, %c0_14] : memref<1x1xf32, #tpu.memory_space<vmem>>, vector<1x1xf32>
    %c0_15 = arith.constant 0 : index
    %c0_16 = arith.constant 0 : index
    %21 = vector.load %arg6[%c0_15, %c0_16] : memref<256x128xbf16, #tpu.memory_space<vmem>>, vector<256x128xbf16>
    %22 = arith.extf %21 : vector<256x128xbf16> to vector<256x128xf32>
    %23 = vector.broadcast %20 : vector<1x1xf32> to vector<256x128xf32>
    %24 = arith.mulf %23, %22 : vector<256x128xf32>
    %25 = arith.addf %19, %24 : vector<256x128xf32>
    %c0_17 = arith.constant 0 : index
    %c0_18 = arith.constant 0 : index
    %26 = vector.load %arg11[%c0_17, %c0_18] : memref<2x128xf32, #tpu.memory_space<vmem>>, vector<2x128xf32>
    %27 = arith.truncf %18 : vector<2x256xf32> to vector<2x256xbf16>
    %28 = arith.truncf %25 : vector<256x128xf32> to vector<256x128xbf16>
    %cst_19 = arith.constant dense<0.000000e+00> : vector<2x128xf32>
    %29 = tpu.matmul %27, %28, %cst_19 {dimension_numbers = #tpu.dot_dimension_numbers<[1], [0], [0], [1], [0, 0, 1, 1], [], []>} : vector<2x256xbf16>, vector<256x128xbf16>, vector<2x128xf32> -> vector<2x128xf32>
    %30 = arith.addf %26, %29 : vector<2x128xf32>
    %c0_20 = arith.constant 0 : index
    %c0_21 = arith.constant 0 : index
    %31 = vector.load %arg11[%c0_20, %c0_21] : memref<2x128xf32, #tpu.memory_space<vmem>>, vector<2x128xf32>
    tpu.vector_store %arg11[%c0_20, %c0_21], %30 {strides = array<i32>} : memref<2x128xf32, #tpu.memory_space<vmem>>, vector<2x128xf32>,
    %c1_i32 = arith.constant 1 : i32
    %32 = arith.cmpi eq, %arg0, %c1_i32 : i32
    %33 = arith.extui %32 : i1 to i32
    %c0_i32_22 = arith.constant 0 : i32
    %34 = arith.cmpi ne, %33, %c0_i32_22 : i32
    scf.if %34 {
      %c0_23 = arith.constant 0 : index
      %c0_24 = arith.constant 0 : index
      %35 = vector.load %arg11[%c0_23, %c0_24] : memref<2x128xf32, #tpu.memory_space<vmem>>, vector<2x128xf32>
      %c0_25 = arith.constant 0 : index
      %c0_26 = arith.constant 0 : index
      %36 = vector.load %arg7[%c0_25, %c0_26] : memref<1x128xf32, #tpu.memory_space<vmem>>, vector<1x128xf32>
      %37 = vector.broadcast %36 : vector<1x128xf32> to vector<2x128xf32>
      %38 = arith.addf %35, %37 : vector<2x128xf32>
      %c0_27 = arith.constant 0 : index
      %c0_28 = arith.constant 0 : index
      %39 = vector.load %arg10[%c0_27, %c0_28] : memref<2x128xf32, #tpu.memory_space<vmem>>, vector<2x128xf32>
      tpu.vector_store %arg10[%c0_27, %c0_28], %38 {strides = array<i32>} : memref<2x128xf32, #tpu.memory_space<vmem>>, vector<2x128xf32>,
    } else {
    }
    return
  }
  func.func @transform_0(%arg0: i32) -> (i32, i32) {
    %c0_i32 = arith.constant 0 : i32
    %c0_i32_0 = arith.constant 0 : i32
    %c0_i32_1 = arith.constant 0 : i32
    return %c0_i32, %c0_i32_0 : i32, i32
  }
  func.func @transform_1(%arg0: i32) -> (i32, i32) {
    %c0_i32 = arith.constant 0 : i32
    %c0_i32_0 = arith.constant 0 : i32
    return %c0_i32, %arg0 : i32, i32
  }
  func.func @transform_2(%arg0: i32) -> (i32, i32) {
    %c0_i32 = arith.constant 0 : i32
    %c0_i32_0 = arith.constant 0 : i32
    return %c0_i32, %arg0 : i32, i32
  }
  func.func @transform_3(%arg0: i32) -> (i32, i32) {
    %c0_i32 = arith.constant 0 : i32
    %c0_i32_0 = arith.constant 0 : i32
    return %c0_i32, %arg0 : i32, i32
  }
  func.func @transform_4(%arg0: i32) -> (i32, i32) {
    %c0_i32 = arith.constant 0 : i32
    %c0_i32_0 = arith.constant 0 : i32
    return %arg0, %c0_i32 : i32, i32
  }
  func.func @transform_5(%arg0: i32) -> (i32, i32) {
    %c0_i32 = arith.constant 0 : i32
    %c0_i32_0 = arith.constant 0 : i32
    return %arg0, %c0_i32 : i32, i32
  }
  func.func @transform_6(%arg0: i32) -> (i32, i32) {
    %c0_i32 = arith.constant 0 : i32
    %c0_i32_0 = arith.constant 0 : i32
    %c0_i32_1 = arith.constant 0 : i32
    return %c0_i32, %c0_i32_0 : i32, i32
  }
  func.func @transform_7(%arg0: i32) -> (i32, i32) {
    %c0_i32 = arith.constant 0 : i32
    %c0_i32_0 = arith.constant 0 : i32
    %c0_i32_1 = arith.constant 0 : i32
    return %c0_i32, %c0_i32_0 : i32, i32
  }
  func.func @transform_8(%arg0: i32) -> (i32, i32) {
    %c0_i32 = arith.constant 0 : i32
    %c0_i32_0 = arith.constant 0 : i32
    %c0_i32_1 = arith.constant 0 : i32
    return %c0_i32, %c0_i32_0 : i32, i32
  }
  func.func @transform_9(%arg0: i32) -> (i32, i32) {
    %c0_i32 = arith.constant 0 : i32
    %c0_i32_0 = arith.constant 0 : i32
    %c0_i32_1 = arith.constant 0 : i32
    return %c0_i32, %c0_i32_0 : i32, i32
  }
}

</mosaic_0001>

<bundles_post_ra>
// kernel: noisy_dqn_forward.6
= control target key start
LH: loop header
LB: loop body
LE: loop exit
PB: predicated region body
PF: predicated region fallthrough
CT: control target
= control target key end

     0   :  { %vm276_vm0 = vcmask 261120   ;;  %s691_s1 = inlined_call_operand.vmem [shape: f32[256,32], index: 1, kind: input, shape index: {}]   ;;  %s692_s2 = inlined_call_operand.vmem [shape: f32[1,32], index: 2, kind: input, shape index: {}]   ;;  %s693_s0 = inlined_call_operand.vmem [shape: bf16[128,256], index: 0, kind: input, shape index: {}]   ;;  %s694_s3 = inlined_call_operand.vmem [shape: f32[128,32], index: 3, kind: output, shape index: {}]  }
   0x1   :  { %v44_v0 = vld [vmem:[%s691_s1 + $0x70] sm:$0xff]  ;;  %v45_v1 = vld [vmem:[%s691_s1 + $0x78] sm:$0xff]  ;;  %v42_v5 = vld [vmem:[%s691_s1 + $0x60] sm:$0xff] }
   0x2   :  { %v60_v2 = vld [vmem:[%s691_s1 + $0xf0] sm:$0xff]  ;;  %v69_v3 = vpack.c.bf16 %v45_v1, %v44_v0  ;;  %v61_v4 = vld [vmem:[%s691_s1 + $0xf8] sm:$0xff]  ;;  %v43_v6 = vld [vmem:[%s691_s1 + $0x68] sm:$0xff] }
   0x3   :  { %v77_v7 = vpack.c.bf16 %v61_v4, %v60_v2  ;;  %v58_v8 = vld [vmem:[%s691_s1 + $0xe0] sm:$0xff]  ;;  %v59_v9 = vld [vmem:[%s691_s1 + $0xe8] sm:$0xff]  ;;  %v68_v10 = vpack.c.bf16 %v43_v6, %v42_v5  ;;  %v40_v12 = vld [vmem:[%s691_s1 + $0x50] sm:$0xff] }
   0x4   :  { %162 = vmatpush.bf16.msra.mxu0 %v69_v3  ;;  %377 = vmatpush.bf16.msra.mxu2 %v69_v3  ;;  %v76_v11 = vpack.c.bf16 %v59_v9, %v58_v8  ;;  %v41_v13 = vld [vmem:[%s691_s1 + $0x58] sm:$0xff]  ;;  %v56_v14 = vld [vmem:[%s691_s1 + $0xd0] sm:$0xff]  ;;  %v38_v18 = vld [vmem:[%s691_s1 + $0x40] sm:$0xff] }
   0x5   :  { %211 = vmatpush.bf16.msra.mxu1 %v77_v7  ;;  %385 = vmatpush.bf16.msra.mxu3 %v77_v7  ;;  %v57_v15 = vld [vmem:[%s691_s1 + $0xd8] sm:$0xff]  ;;  %v67_v16 = vpack.c.bf16 %v41_v13, %v40_v12  ;;  %v39_v19 = vld [vmem:[%s691_s1 + $0x48] sm:$0xff]  ;;  %v54_v20 = vld [vmem:[%s691_s1 + $0xc0] sm:$0xff] }
   0x6   :  { %v75_v17 = vpack.c.bf16 %v57_v15, %v56_v14  ;;  %v55_v21 = vld [vmem:[%s691_s1 + $0xc8] sm:$0xff]  ;;  %v66_v22 = vpack.c.bf16 %v39_v19, %v38_v18  ;;  %v36_v24 = vld [vmem:[%s691_s1 + $0x30] sm:$0xff]  ;;  %v37_v25 = vld [vmem:[%s691_s1 + $0x38] sm:$0xff] }
   0x7   :  { %v74_v23 = vpack.c.bf16 %v55_v21, %v54_v20  ;;  %v52_v26 = vld [vmem:[%s691_s1 + $0xb0] sm:$0xff]  ;;  %v53_v27 = vld [vmem:[%s691_s1 + $0xb8] sm:$0xff]  ;;  %v65_v28 = vpack.c.bf16 %v37_v25, %v36_v24  ;;  %v34_v30 = vld [vmem:[%s691_s1 + $0x20] sm:$0xff] }
   0x8   :  { %163 = vmatpush.bf16.msra.mxu0 %v68_v10  ;;  %378 = vmatpush.bf16.msra.mxu2 %v68_v10  ;;  %v73_v29 = vpack.c.bf16 %v53_v27, %v52_v26  ;;  %v35_v31 = vld [vmem:[%s691_s1 + $0x28] sm:$0xff]  ;;  %v50_v32 = vld [vmem:[%s691_s1 + $0xa0] sm:$0xff]  ;;  %v32_v36 = vld [vmem:[%s691_s1 + $0x10] sm:$0xff] }
   0x9   :  { %212 = vmatpush.bf16.msra.mxu1 %v76_v11  ;;  %386 = vmatpush.bf16.msra.mxu3 %v76_v11  ;;  %v51_v33 = vld [vmem:[%s691_s1 + $0xa8] sm:$0xff]  ;;  %v64_v34 = vpack.c.bf16 %v35_v31, %v34_v30  ;;  %v33_v37 = vld [vmem:[%s691_s1 + $0x18] sm:$0xff]  ;;  %v48_v38 = vld [vmem:[%s691_s1 + $0x90] sm:$0xff] }
   0xa   :  { %v72_v35 = vpack.c.bf16 %v51_v33, %v50_v32  ;;  %v49_v39 = vld [vmem:[%s691_s1 + $0x98] sm:$0xff]  ;;  %v63_v40 = vpack.c.bf16 %v33_v37, %v32_v36  ;;  %v30_v42 = vld [vmem:[%s691_s1] sm:$0xff]  ;;  %v31_v43 = vld [vmem:[%s691_s1 + $0x8] sm:$0xff] }
   0xb   :  { %v71_v41 = vpack.c.bf16 %v49_v39, %v48_v38  ;;  %v46_v44 = vld [vmem:[%s691_s1 + $0x80] sm:$0xff]  ;;  %v47_v45 = vld [vmem:[%s691_s1 + $0x88] sm:$0xff]  ;;  %v62_v48 = vpack.c.bf16 %v31_v43, %v30_v42  ;;  %v307_v60 = vld [vmem:[%s693_s0 + $0x10] sm:$0xf] }
   0xc   :  { %164 = vmatpush.bf16.msra.mxu0 %v67_v16  ;;  %379 = vmatpush.bf16.msra.mxu2 %v67_v16  ;;  %v299_v46 = vld [vmem:[%s693_s0] sm:$0xf]  ;;  %v362_v47 = vld [vmem:[%s693_s0 + $0x4] sm:$0xf0]  ;;  %v361_v51 = vld [vmem:[%s693_s0 + $0x4] sm:$0xf]  ;;  %v70_v52 = vpack.c.bf16 %v47_v45, %v46_v44 }
   0xd   :  { %213 = vmatpush.bf16.msra.mxu1 %v75_v17  ;;  %387 = vmatpush.bf16.msra.mxu3 %v75_v17  ;;  %v331_v49 = vld [vmem:[%s693_s0 + $0x40] sm:$0xf]  ;;  %v370_v50 = vld [vmem:[%s693_s0 + $0x44] sm:$0xf0]  ;;  %v301_v53 = vld [vmem:[%s693_s0 + $0x8] sm:$0xf0]  ;;  %v300_v56 = vor.u32 %v362_v47, %v299_v46 }
   0xe   :  { %v369_v54 = vld [vmem:[%s693_s0 + $0x44] sm:$0xf]  ;;  %v333_v55 = vld [vmem:[%s693_s0 + $0x48] sm:$0xf0]  ;;  %v332_v57 = vor.u32 %v370_v50, %v331_v49  ;;  %v304_v58 = vor.u32 %v361_v51, %v301_v53  ;;  %v364_v61 = vld [vmem:[%s693_s0 + $0x14] sm:$0xf0] }
   0xf   :  { %v336_v59 = vor.u32 %v369_v54, %v333_v55  ;;  %v339_v62 = vld [vmem:[%s693_s0 + $0x50] sm:$0xf]  ;;  %v372_v63 = vld [vmem:[%s693_s0 + $0x54] sm:$0xf0]  ;;  %v363_v0 = vld [vmem:[%s693_s0 + $0x14] sm:$0xf]  ;;  %v308_v4 = vor.u32 %v364_v61, %v307_v60 }
  0x10   :  { %165 = vmatpush.bf16.msra.mxu0 %v66_v22  ;;  %380 = vmatpush.bf16.msra.mxu2 %v66_v22  ;;  %v309_v1 = vld [vmem:[%s693_s0 + $0x18] sm:$0xf0]  ;;  %v371_v2 = vld [vmem:[%s693_s0 + $0x54] sm:$0xf]  ;;  %v340_v5 = vor.u32 %v372_v63, %v339_v62  ;;  %v315_v8 = vld [vmem:[%s693_s0 + $0x20] sm:$0xf] }
  0x11   :  { %214 = vmatpush.bf16.msra.mxu1 %v74_v23  ;;  %388 = vmatpush.bf16.msra.mxu3 %v74_v23  ;;  %v341_v3 = vld [vmem:[%s693_s0 + $0x58] sm:$0xf0]  ;;  %v312_v6 = vor.u32 %v363_v0, %v309_v1  ;;  %v366_v9 = vld [vmem:[%s693_s0 + $0x24] sm:$0xf0]  ;;  %v347_v10 = vld [vmem:[%s693_s0 + $0x60] sm:$0xf] }
  0x12   :  { %v344_v7 = vor.u32 %v371_v2, %v341_v3  ;;  %v374_v11 = vld [vmem:[%s693_s0 + $0x64] sm:$0xf0]  ;;  %v365_v12 = vld [vmem:[%s693_s0 + $0x24] sm:$0xf]  ;;  %v317_v13 = vld [vmem:[%s693_s0 + $0x28] sm:$0xf0]  ;;  %v316_v16 = vor.u32 %v366_v9, %v315_v8 }
  0x13   :  { %v373_v14 = vld [vmem:[%s693_s0 + $0x64] sm:$0xf]  ;;  %v349_v15 = vld [vmem:[%s693_s0 + $0x68] sm:$0xf0]  ;;  %v348_v17 = vor.u32 %v374_v11, %v347_v10  ;;  %v320_v18 = vor.u32 %v365_v12, %v317_v13  ;;  %v323_v20 = vld [vmem:[%s693_s0 + $0x30] sm:$0xf] }
  0x14   :  { %166 = vmatpush.bf16.msra.mxu0 %v65_v28  ;;  %381 = vmatpush.bf16.msra.mxu2 %v65_v28  ;;  %v352_v19 = vor.u32 %v373_v14, %v349_v15  ;;  %v368_v21 = vld [vmem:[%s693_s0 + $0x34] sm:$0xf0]  ;;  %v355_v22 = vld [vmem:[%s693_s0 + $0x70] sm:$0xf]  ;;  %v367_v24 = vld [vmem:[%s693_s0 + $0x34] sm:$0xf] }
  0x15   :  { %215 = vmatpush.bf16.msra.mxu1 %v73_v29  ;;  %389 = vmatpush.bf16.msra.mxu3 %v73_v29  ;;  %v376_v23 = vld [vmem:[%s693_s0 + $0x74] sm:$0xf0]  ;;  %v325_v25 = vld [vmem:[%s693_s0 + $0x38] sm:$0xf0]  ;;  %v375_v26 = vld [vmem:[%s693_s0 + $0x74] sm:$0xf]  ;;  %v324_v28 = vor.u32 %v368_v21, %v323_v20 }
  0x16   :  { %v357_v27 = vld [vmem:[%s693_s0 + $0x78] sm:$0xf0]  ;;  %v356_v29 = vor.u32 %v376_v23, %v355_v22  ;;  %v328_v30 = vor.u32 %v367_v24, %v325_v25  ;;  %v609_v32 = vld [vmem:[%s692_s2] ss:$0 sm:$0xff] }
  0x17   :  { %v360_v31 = vor.u32 %v375_v26, %v357_v27 }
  0x18   :  { %167 = vmatpush.bf16.msra.mxu0 %v64_v34  ;;  %382 = vmatpush.bf16.msra.mxu2 %v64_v34 }
  0x19   :  { %216 = vmatpush.bf16.msra.mxu1 %v72_v35  ;;  %390 = vmatpush.bf16.msra.mxu3 %v72_v35 }
  0x1c   :  { %168 = vmatpush.bf16.msra.mxu0 %v63_v40  ;;  %383 = vmatpush.bf16.msra.mxu2 %v63_v40 }
  0x1d   :  { %217 = vmatpush.bf16.msra.mxu1 %v71_v41  ;;  %391 = vmatpush.bf16.msra.mxu3 %v71_v41 }
  0x20   :  { %169 = vmatpush.bf16.msra.mxu0 %v62_v48  ;;  %384 = vmatpush.bf16.msra.mxu2 %v62_v48 }
  0x21   :  { %218 = vmatpush.bf16.msra.mxu1 %v70_v52  ;;  %392 = vmatpush.bf16.msra.mxu3 %v70_v52 }
  0x23   :  { %170 = vmatmul.bf16.vlgmr.msra.gmra.mxu0 %v300_v56  ;;  %190 = vmatmul.bf16.vlgmr.msra.gmra.mxu2 %v332_v57 }
  0x24   :  { %219 = vmatmul.bf16.vlgmr.msra.gmra.mxu1 %v304_v58  ;;  %239 = vmatmul.bf16.vlgmr.msra.gmra.mxu3 %v336_v59 }
  0x33   :  { %175 = vmatmul.bf16.gmra.mxu0 %v308_v4  ;;  %195 = vmatmul.bf16.gmra.mxu2 %v340_v5 }
  0x34   :  { %224 = vmatmul.bf16.gmra.mxu1 %v312_v6  ;;  %244 = vmatmul.bf16.gmra.mxu3 %v344_v7 }
  0x43   :  { %180 = vmatmul.bf16.gmra.mxu0 %v316_v16  ;;  %200 = vmatmul.bf16.gmra.mxu2 %v348_v17 }
  0x44   :  { %229 = vmatmul.bf16.gmra.mxu1 %v320_v18  ;;  %249 = vmatmul.bf16.gmra.mxu3 %v352_v19 }
  0x53   :  { %185 = vmatmul.bf16.gmra.mxu0 %v324_v28  ;;  %205 = vmatmul.bf16.gmra.mxu2 %v356_v29 }
  0x54   :  { %234 = vmatmul.bf16.gmra.mxu1 %v328_v30  ;;  %254 = vmatmul.bf16.gmra.mxu3 %v360_v31 }
  0xa0   :  { %v171_v33 = vpop.f32.mrf.mxu0 }
  0xa1   :  { %v172_v34 = vadd.f32 %v609_v32, %v171_v33  ;;  %v220_v35 = vpop.f32.mrf.mxu1 }
  0xa3   :  { %v221_v36 = vadd.f32 %v220_v35, %v172_v34 }
  0xa5   :  { %v260_v37 = vmax.f32 %v221_v36, 0.0 }
  0xa6   :  { %v191_v38 = vpop.f32.mrf.mxu2 }
  0xa7   :  { %277 = vst.msk [vmem:[%s694_s3] sm:$0xff] %vm276_vm0, %v260_v37  ;;  %v192_v39 = vadd.f32 %v609_v32, %v191_v38  ;;  %v240_v40 = vpop.f32.mrf.mxu3 }
  0xa8   :  { %v173_v41 = vpop.f32.mrf.mxu0 }
  0xa9   :  { %v241_v42 = vadd.f32 %v240_v40, %v192_v39  ;;  %v174_v43 = vadd.f32 %v609_v32, %v173_v41  ;;  %v222_v44 = vpop.f32.mrf.mxu1 }
  0xab   :  { %v268_v45 = vmax.f32 %v241_v42, 0.0  ;;  %v223_v46 = vadd.f32 %v222_v44, %v174_v43 }
  0xad   :  { %285 = vst.msk [vmem:[%s694_s3 + $0x40] sm:$0xff] %vm276_vm0, %v268_v45  ;;  %v261_v47 = vmax.f32 %v223_v46, 0.0 }
  0xae   :  { %v193_v48 = vpop.f32.mrf.mxu2 }
  0xaf   :  { %278 = vst.msk [vmem:[%s694_s3 + $0x8] sm:$0xff] %vm276_vm0, %v261_v47  ;;  %v194_v49 = vadd.f32 %v609_v32, %v193_v48  ;;  %v242_v50 = vpop.f32.mrf.mxu3 }
  0xb0   :  { %v176_v51 = vpop.f32.mrf.mxu0 }
  0xb1   :  { %v243_v52 = vadd.f32 %v242_v50, %v194_v49  ;;  %v177_v53 = vadd.f32 %v609_v32, %v176_v51  ;;  %v225_v54 = vpop.f32.mrf.mxu1 }
  0xb3   :  { %v269_v55 = vmax.f32 %v243_v52, 0.0  ;;  %v226_v56 = vadd.f32 %v225_v54, %v177_v53 }
  0xb5   :  { %286 = vst.msk [vmem:[%s694_s3 + $0x48] sm:$0xff] %vm276_vm0, %v269_v55  ;;  %v262_v57 = vmax.f32 %v226_v56, 0.0 }
  0xb6   :  { %v196_v58 = vpop.f32.mrf.mxu2 }
  0xb7   :  { %279 = vst.msk [vmem:[%s694_s3 + $0x10] sm:$0xff] %vm276_vm0, %v262_v57  ;;  %v197_v59 = vadd.f32 %v609_v32, %v196_v58  ;;  %v245_v60 = vpop.f32.mrf.mxu3 }
  0xb8   :  { %v178_v61 = vpop.f32.mrf.mxu0 }
  0xb9   :  { %v246_v62 = vadd.f32 %v245_v60, %v197_v59  ;;  %v179_v63 = vadd.f32 %v609_v32, %v178_v61  ;;  %v227_v0 = vpop.f32.mrf.mxu1 }
  0xbb   :  { %v270_v1 = vmax.f32 %v246_v62, 0.0  ;;  %v228_v2 = vadd.f32 %v227_v0, %v179_v63 }
  0xbd   :  { %287 = vst.msk [vmem:[%s694_s3 + $0x50] sm:$0xff] %vm276_vm0, %v270_v1  ;;  %v263_v3 = vmax.f32 %v228_v2, 0.0 }
  0xbe   :  { %v198_v4 = vpop.f32.mrf.mxu2 }
  0xbf   :  { %280 = vst.msk [vmem:[%s694_s3 + $0x18] sm:$0xff] %vm276_vm0, %v263_v3  ;;  %v199_v5 = vadd.f32 %v609_v32, %v198_v4  ;;  %v247_v6 = vpop.f32.mrf.mxu3 }
  0xc0   :  { %v181_v7 = vpop.f32.mrf.mxu0 }
  0xc1   :  { %v248_v8 = vadd.f32 %v247_v6, %v199_v5  ;;  %v182_v9 = vadd.f32 %v609_v32, %v181_v7  ;;  %v230_v10 = vpop.f32.mrf.mxu1 }
  0xc3   :  { %v271_v11 = vmax.f32 %v248_v8, 0.0  ;;  %v231_v12 = vadd.f32 %v230_v10, %v182_v9 }
  0xc5   :  { %288 = vst.msk [vmem:[%s694_s3 + $0x58] sm:$0xff] %vm276_vm0, %v271_v11  ;;  %v264_v13 = vmax.f32 %v231_v12, 0.0 }
  0xc6   :  { %v201_v14 = vpop.f32.mrf.mxu2 }
  0xc7   :  { %281 = vst.msk [vmem:[%s694_s3 + $0x20] sm:$0xff] %vm276_vm0, %v264_v13  ;;  %v202_v15 = vadd.f32 %v609_v32, %v201_v14  ;;  %v250_v16 = vpop.f32.mrf.mxu3 }
  0xc8   :  { %v183_v17 = vpop.f32.mrf.mxu0 }
  0xc9   :  { %v251_v18 = vadd.f32 %v250_v16, %v202_v15  ;;  %v184_v19 = vadd.f32 %v609_v32, %v183_v17  ;;  %v232_v20 = vpop.f32.mrf.mxu1 }
  0xcb   :  { %v272_v21 = vmax.f32 %v251_v18, 0.0  ;;  %v233_v22 = vadd.f32 %v232_v20, %v184_v19 }
  0xcd   :  { %289 = vst.msk [vmem:[%s694_s3 + $0x60] sm:$0xff] %vm276_vm0, %v272_v21  ;;  %v265_v23 = vmax.f32 %v233_v22, 0.0 }
  0xce   :  { %v203_v24 = vpop.f32.mrf.mxu2 }
  0xcf   :  { %282 = vst.msk [vmem:[%s694_s3 + $0x28] sm:$0xff] %vm276_vm0, %v265_v23  ;;  %v204_v25 = vadd.f32 %v609_v32, %v203_v24  ;;  %v252_v26 = vpop.f32.mrf.mxu3 }
  0xd0   :  { %v186_v27 = vpop.f32.mrf.mxu0 }
  0xd1   :  { %v253_v28 = vadd.f32 %v252_v26, %v204_v25  ;;  %v187_v29 = vadd.f32 %v609_v32, %v186_v27  ;;  %v235_v30 = vpop.f32.mrf.mxu1 }
  0xd3   :  { %v273_v31 = vmax.f32 %v253_v28, 0.0  ;;  %v236_v33 = vadd.f32 %v235_v30, %v187_v29 }
  0xd5   :  { %290 = vst.msk [vmem:[%s694_s3 + $0x68] sm:$0xff] %vm276_vm0, %v273_v31  ;;  %v266_v34 = vmax.f32 %v236_v33, 0.0 }
  0xd6   :  { %v206_v35 = vpop.f32.mrf.mxu2 }
  0xd7   :  { %283 = vst.msk [vmem:[%s694_s3 + $0x30] sm:$0xff] %vm276_vm0, %v266_v34  ;;  %v207_v36 = vadd.f32 %v609_v32, %v206_v35  ;;  %v255_v37 = vpop.f32.mrf.mxu3 }
  0xd8   :  { %v188_v38 = vpop.f32.mrf.mxu0 }
  0xd9   :  { %v256_v39 = vadd.f32 %v255_v37, %v207_v36  ;;  %v189_v40 = vadd.f32 %v609_v32, %v188_v38  ;;  %v237_v41 = vpop.f32.mrf.mxu1 }
  0xdb   :  { %v274_v42 = vmax.f32 %v256_v39, 0.0  ;;  %v238_v43 = vadd.f32 %v237_v41, %v189_v40 }
  0xdd   :  { %291 = vst.msk [vmem:[%s694_s3 + $0x70] sm:$0xff] %vm276_vm0, %v274_v42  ;;  %v267_v44 = vmax.f32 %v238_v43, 0.0 }
  0xde   :  { %v208_v45 = vpop.f32.mrf.mxu2 }
  0xdf   :  { %284 = vst.msk [vmem:[%s694_s3 + $0x38] sm:$0xff] %vm276_vm0, %v267_v44  ;;  %v209_v46 = vadd.f32 %v609_v32, %v208_v45  ;;  %v257_v47 = vpop.f32.mrf.mxu3 }
  0xe1   :  { %v258_v48 = vadd.f32 %v257_v47, %v209_v46 }
  0xe3   :  { %v275_v49 = vmax.f32 %v258_v48, 0.0 }
  0xe5   :  { %292 = vst.msk [vmem:[%s694_s3 + $0x78] sm:$0xff] %vm276_vm0, %v275_v49 }

// kernel: noisy_dqn_forward.7
= control target key start
LH: loop header
LB: loop body
LE: loop exit
PB: predicated region body
PF: predicated region fallthrough
CT: control target
= control target key end

     0   :  { %vm229_vm0 = vcmask 523264   ;;  %vm232_vm1 = vcmask 517120   ;;  %s513_s1 = inlined_call_operand.vmem [shape: f32[512,64], index: 1, kind: input, shape index: {}]   ;;  %s514_s2 = inlined_call_operand.vmem [shape: f32[1,64], index: 2, kind: input, shape index: {}]   ;;  %s515_s0 = inlined_call_operand.vmem [shape: bf16[18,512], index: 0, kind: input, shape index: {}]   ;;  %s516_s3 = inlined_call_operand.vmem [shape: f32[18,64], index: 3, kind: output, shape index: {}]  }
   0x1   :  { %v34_v0 = vld [vmem:[%s513_s1 + $0x70] sm:$0xff]  ;;  %v35_v1 = vld [vmem:[%s513_s1 + $0x78] sm:$0xff]  ;;  %v32_v11 = vld [vmem:[%s513_s1 + $0x60] sm:$0xff] }
   0x2   :  { %v50_v2 = vld [vmem:[%s513_s1 + $0xf0] sm:$0xff]  ;;  %v91_v3 = vpack.c.bf16 %v35_v1, %v34_v0  ;;  %v51_v4 = vld [vmem:[%s513_s1 + $0xf8] sm:$0xff]  ;;  %v33_v13 = vld [vmem:[%s513_s1 + $0x68] sm:$0xff] }
   0x3   :  { %v66_v5 = vld [vmem:[%s513_s1 + $0x170] sm:$0xff]  ;;  %v67_v6 = vld [vmem:[%s513_s1 + $0x178] sm:$0xff]  ;;  %v99_v7 = vpack.c.bf16 %v51_v4, %v50_v2  ;;  %v48_v14 = vld [vmem:[%s513_s1 + $0xe0] sm:$0xff]  ;;  %v90_v16 = vpack.c.bf16 %v33_v13, %v32_v11 }
   0x4   :  { %v107_v8 = vpack.c.bf16 %v67_v6, %v66_v5  ;;  %v82_v9 = vld [vmem:[%s513_s1 + $0x1f0] sm:$0xff]  ;;  %v83_v10 = vld [vmem:[%s513_s1 + $0x1f8] sm:$0xff]  ;;  %154 = vmatpush.bf16.msra.mxu0 %v91_v3  ;;  %v49_v15 = vld [vmem:[%s513_s1 + $0xe8] sm:$0xff] }
   0x5   :  { %v115_v12 = vpack.c.bf16 %v83_v10, %v82_v9  ;;  %172 = vmatpush.bf16.msra.mxu1 %v99_v7  ;;  %v98_v17 = vpack.c.bf16 %v49_v15, %v48_v14  ;;  %v64_v18 = vld [vmem:[%s513_s1 + $0x160] sm:$0xff]  ;;  %v65_v19 = vld [vmem:[%s513_s1 + $0x168] sm:$0xff]  ;;  %v30_v23 = vld [vmem:[%s513_s1 + $0x50] sm:$0xff] }
   0x6   :  { %190 = vmatpush.bf16.msra.mxu2 %v107_v8  ;;  %v80_v20 = vld [vmem:[%s513_s1 + $0x1e0] sm:$0xff]  ;;  %v106_v21 = vpack.c.bf16 %v65_v19, %v64_v18  ;;  %v81_v22 = vld [vmem:[%s513_s1 + $0x1e8] sm:$0xff]  ;;  %v31_v24 = vld [vmem:[%s513_s1 + $0x58] sm:$0xff] }
   0x7   :  { %208 = vmatpush.bf16.msra.mxu3 %v115_v12  ;;  %v114_v25 = vpack.c.bf16 %v81_v22, %v80_v20  ;;  %v46_v26 = vld [vmem:[%s513_s1 + $0xd0] sm:$0xff]  ;;  %v47_v27 = vld [vmem:[%s513_s1 + $0xd8] sm:$0xff]  ;;  %v89_v29 = vpack.c.bf16 %v31_v24, %v30_v23  ;;  %v28_v35 = vld [vmem:[%s513_s1 + $0x40] sm:$0xff] }
   0x8   :  { %v62_v28 = vld [vmem:[%s513_s1 + $0x150] sm:$0xff]  ;;  %155 = vmatpush.bf16.msra.mxu0 %v90_v16  ;;  %v63_v30 = vld [vmem:[%s513_s1 + $0x158] sm:$0xff]  ;;  %v97_v33 = vpack.c.bf16 %v47_v27, %v46_v26  ;;  %v29_v36 = vld [vmem:[%s513_s1 + $0x48] sm:$0xff] }
   0x9   :  { %v78_v31 = vld [vmem:[%s513_s1 + $0x1d0] sm:$0xff]  ;;  %v79_v32 = vld [vmem:[%s513_s1 + $0x1d8] sm:$0xff]  ;;  %173 = vmatpush.bf16.msra.mxu1 %v98_v17  ;;  %v105_v34 = vpack.c.bf16 %v63_v30, %v62_v28  ;;  %v44_v37 = vld [vmem:[%s513_s1 + $0xc0] sm:$0xff]  ;;  %v88_v44 = vpack.c.bf16 %v29_v36, %v28_v35 }
   0xa   :  { %191 = vmatpush.bf16.msra.mxu2 %v106_v21  ;;  %v113_v38 = vpack.c.bf16 %v79_v32, %v78_v31  ;;  %v45_v39 = vld [vmem:[%s513_s1 + $0xc8] sm:$0xff]  ;;  %v60_v40 = vld [vmem:[%s513_s1 + $0x140] sm:$0xff]  ;;  %v26_v47 = vld [vmem:[%s513_s1 + $0x30] sm:$0xff] }
   0xb   :  { %209 = vmatpush.bf16.msra.mxu3 %v114_v25  ;;  %v61_v41 = vld [vmem:[%s513_s1 + $0x148] sm:$0xff]  ;;  %v76_v42 = vld [vmem:[%s513_s1 + $0x1c0] sm:$0xff]  ;;  %v96_v45 = vpack.c.bf16 %v45_v39, %v44_v37  ;;  %v27_v48 = vld [vmem:[%s513_s1 + $0x38] sm:$0xff] }
   0xc   :  { %v77_v43 = vld [vmem:[%s513_s1 + $0x1c8] sm:$0xff]  ;;  %156 = vmatpush.bf16.msra.mxu0 %v89_v29  ;;  %v104_v46 = vpack.c.bf16 %v61_v41, %v60_v40  ;;  %v42_v49 = vld [vmem:[%s513_s1 + $0xb0] sm:$0xff]  ;;  %v43_v51 = vld [vmem:[%s513_s1 + $0xb8] sm:$0xff]  ;;  %v87_v56 = vpack.c.bf16 %v27_v48, %v26_v47 }
   0xd   :  { %174 = vmatpush.bf16.msra.mxu1 %v97_v33  ;;  %v112_v50 = vpack.c.bf16 %v77_v43, %v76_v42  ;;  %v58_v52 = vld [vmem:[%s513_s1 + $0x130] sm:$0xff]  ;;  %v59_v53 = vld [vmem:[%s513_s1 + $0x138] sm:$0xff]  ;;  %v95_v57 = vpack.c.bf16 %v43_v51, %v42_v49  ;;  %v24_v59 = vld [vmem:[%s513_s1 + $0x20] sm:$0xff] }
   0xe   :  { %192 = vmatpush.bf16.msra.mxu2 %v105_v34  ;;  %v74_v54 = vld [vmem:[%s513_s1 + $0x1b0] sm:$0xff]  ;;  %v75_v55 = vld [vmem:[%s513_s1 + $0x1b8] sm:$0xff]  ;;  %v103_v58 = vpack.c.bf16 %v59_v53, %v58_v52  ;;  %v25_v60 = vld [vmem:[%s513_s1 + $0x28] sm:$0xff] }
   0xf   :  { %210 = vmatpush.bf16.msra.mxu3 %v113_v38  ;;  %v40_v61 = vld [vmem:[%s513_s1 + $0xa0] sm:$0xff]  ;;  %v111_v62 = vpack.c.bf16 %v75_v55, %v74_v54  ;;  %v41_v63 = vld [vmem:[%s513_s1 + $0xa8] sm:$0xff]  ;;  %v86_v4 = vpack.c.bf16 %v25_v60, %v24_v59  ;;  %v22_v7 = vld [vmem:[%s513_s1 + $0x10] sm:$0xff] }
  0x10   :  { %157 = vmatpush.bf16.msra.mxu0 %v88_v44  ;;  %v56_v0 = vld [vmem:[%s513_s1 + $0x120] sm:$0xff]  ;;  %v57_v1 = vld [vmem:[%s513_s1 + $0x128] sm:$0xff]  ;;  %v94_v5 = vpack.c.bf16 %v41_v63, %v40_v61  ;;  %v23_v8 = vld [vmem:[%s513_s1 + $0x18] sm:$0xff] }
  0x11   :  { %175 = vmatpush.bf16.msra.mxu1 %v96_v45  ;;  %v72_v2 = vld [vmem:[%s513_s1 + $0x1a0] sm:$0xff]  ;;  %v73_v3 = vld [vmem:[%s513_s1 + $0x1a8] sm:$0xff]  ;;  %v102_v6 = vpack.c.bf16 %v57_v1, %v56_v0  ;;  %v38_v9 = vld [vmem:[%s513_s1 + $0x90] sm:$0xff]  ;;  %v85_v16 = vpack.c.bf16 %v23_v8, %v22_v7 }
  0x12   :  { %193 = vmatpush.bf16.msra.mxu2 %v104_v46  ;;  %v110_v10 = vpack.c.bf16 %v73_v3, %v72_v2  ;;  %v39_v11 = vld [vmem:[%s513_s1 + $0x98] sm:$0xff]  ;;  %v54_v12 = vld [vmem:[%s513_s1 + $0x110] sm:$0xff]  ;;  %v20_v17 = vld [vmem:[%s513_s1] sm:$0xff] }
  0x13   :  { %211 = vmatpush.bf16.msra.mxu3 %v112_v50  ;;  %v55_v13 = vld [vmem:[%s513_s1 + $0x118] sm:$0xff]  ;;  %v70_v14 = vld [vmem:[%s513_s1 + $0x190] sm:$0xff]  ;;  %v93_v18 = vpack.c.bf16 %v39_v11, %v38_v9  ;;  %v21_v20 = vld [vmem:[%s513_s1 + $0x8] sm:$0xff] }
  0x14   :  { %158 = vmatpush.bf16.msra.mxu0 %v87_v56  ;;  %v71_v15 = vld [vmem:[%s513_s1 + $0x198] sm:$0xff]  ;;  %v101_v19 = vpack.c.bf16 %v55_v13, %v54_v12  ;;  %v36_v21 = vld [vmem:[%s513_s1 + $0x80] sm:$0xff]  ;;  %v37_v23 = vld [vmem:[%s513_s1 + $0x88] sm:$0xff]  ;;  %v84_v28 = vpack.c.bf16 %v21_v20, %v20_v17 }
  0x15   :  { %176 = vmatpush.bf16.msra.mxu1 %v95_v57  ;;  %v109_v22 = vpack.c.bf16 %v71_v15, %v70_v14  ;;  %v52_v24 = vld [vmem:[%s513_s1 + $0x100] sm:$0xff]  ;;  %v53_v25 = vld [vmem:[%s513_s1 + $0x108] sm:$0xff]  ;;  %v256_v30 = vld [vmem:[%s515_s0 + $0xc] sm:$0xf0]  ;;  %v92_v32 = vpack.c.bf16 %v37_v23, %v36_v21 }
  0x16   :  { %194 = vmatpush.bf16.msra.mxu2 %v103_v58  ;;  %v68_v26 = vld [vmem:[%s513_s1 + $0x180] sm:$0xff]  ;;  %v69_v27 = vld [vmem:[%s513_s1 + $0x188] sm:$0xff]  ;;  %v100_v33 = vpack.c.bf16 %v53_v25, %v52_v24  ;;  %v242_v34 = vld [vmem:[%s515_s0 + $0x10] sm:$0xf0] }
  0x17   :  { %212 = vmatpush.bf16.msra.mxu3 %v111_v62  ;;  %v240_v29 = vld [vmem:[%s515_s0] sm:$0xf]  ;;  %v254_v31 = vld [vmem:[%s515_s0 + $0x4] sm:$0xf]  ;;  %v248_v35 = vld [vmem:[%s515_s0 + $0x8] sm:$0xf]  ;;  %v108_v37 = vpack.c.bf16 %v69_v27, %v68_v26 }
  0x18   :  { %159 = vmatpush.bf16.msra.mxu0 %v86_v4  ;;  %v257_v36 = vld [vmem:[%s515_s0 + $0x14] sm:$0xf0]  ;;  %v255_v38 = vld [vmem:[%s515_s0 + $0xc] sm:$0xf]  ;;  %v250_v39 = vld [vmem:[%s515_s0 + $0x18] sm:$0xf0]  ;;  %v241_v40 = vor.u32 %v256_v30, %v240_v29  ;;  %v245_v41 = vor.u32 %v254_v31, %v242_v34 }
  0x19   :  { %177 = vmatpush.bf16.msra.mxu1 %v94_v5  ;;  %v249_v42 = vor.u32 %v257_v36, %v248_v35  ;;  %v253_v43 = vor.u32 %v255_v38, %v250_v39  ;;  %v18_v44 = vld [vmem:[%s515_s0 + $0x20] sm:$0x11]  ;;  %v19_v45 = vld [vmem:[%s515_s0 + $0x28] sm:$0x11] }
  0x1a   :  { %195 = vmatpush.bf16.msra.mxu2 %v102_v6  ;;  %v134_v46 = vunpack.c.l.b16 %v18_v44  ;;  %v135_v47 = vunpack.c.h.b16 %v18_v44  ;;  %v136_v48 = vunpack.c.l.b16 %v19_v45  ;;  %v137_v49 = vunpack.c.h.b16 %v19_v45  ;;  %v258_v54 = vld [vmem:[%s514_s2] ss:$0 sm:$0xff] }
  0x1b   :  { %213 = vmatpush.bf16.msra.mxu3 %v110_v10 }
  0x1c   :  { %160 = vmatpush.bf16.msra.mxu0 %v85_v16  ;;  %v142_v50 = vpack.c.b16 %v134_v46, %v134_v46  ;;  %v143_v51 = vpack.c.b16 %v135_v47, %v135_v47  ;;  %v144_v52 = vpack.c.b16 %v136_v48, %v136_v48  ;;  %v145_v53 = vpack.c.b16 %v137_v49, %v137_v49 }
  0x1d   :  { %178 = vmatpush.bf16.msra.mxu1 %v93_v18 }
  0x1e   :  { %196 = vmatpush.bf16.msra.mxu2 %v101_v19 }
  0x1f   :  { %214 = vmatpush.bf16.msra.mxu3 %v109_v22 }
  0x20   :  { %161 = vmatpush.bf16.msra.mxu0 %v84_v28 }
  0x21   :  { %179 = vmatpush.bf16.msra.mxu1 %v92_v32 }
  0x22   :  { %197 = vmatpush.bf16.msra.mxu2 %v100_v33 }
  0x23   :  { %215 = vmatpush.bf16.msra.mxu3 %v108_v37  ;;  %162 = vmatmul.bf16.vlgmr.msra.gmra.mxu0 %v241_v40 }
  0x24   :  { %180 = vmatmul.bf16.vlgmr.msra.gmra.mxu1 %v245_v41 }
  0x25   :  { %198 = vmatmul.bf16.vlgmr.msra.gmra.mxu2 %v249_v42 }
  0x26   :  { %216 = vmatmul.bf16.vlgmr.msra.gmra.mxu3 %v253_v43 }
  0x33   :  { %167 = vmatmul.bf16.gmra.mxu0 %v142_v50 }
  0x34   :  { %185 = vmatmul.bf16.gmra.mxu1 %v143_v51 }
  0x35   :  { %203 = vmatmul.bf16.gmra.mxu2 %v144_v52 }
  0x36   :  { %221 = vmatmul.bf16.gmra.mxu3 %v145_v53 }
  0xa0   :  { %v163_v55 = vpop.f32.mrf.mxu0 }
  0xa1   :  { %v164_v56 = vadd.f32 %v258_v54, %v163_v55  ;;  %v181_v57 = vpop.f32.mrf.mxu1 }
  0xa3   :  { %v182_v58 = vadd.f32 %v181_v57, %v164_v56 }
  0xa8   :  { %v199_v59 = vpop.f32.mrf.mxu2  ;;  %v165_v62 = vpop.f32.mrf.mxu0 }
  0xa9   :  { %v200_v60 = vadd.f32 %v199_v59, %v182_v58  ;;  %v217_v61 = vpop.f32.mrf.mxu3  ;;  %v183_v63 = vpop.f32.mrf.mxu1  ;;  %v166_v1 = vadd.f32 %v258_v54, %v165_v62 }
  0xab   :  { %v218_v0 = vadd.f32 %v217_v61, %v200_v60  ;;  %v184_v3 = vadd.f32 %v183_v63, %v166_v1 }
  0xad   :  { %v226_v2 = vmax.f32 %v218_v0, 0.0 }
  0xaf   :  { %230 = vst.msk [vmem:[%s516_s3] sm:$0xff] %vm229_vm0, %v226_v2 }
  0xb0   :  { %v201_v4 = vpop.f32.mrf.mxu2  ;;  %v168_v7 = vpop.f32.mrf.mxu0 }
  0xb1   :  { %v202_v5 = vadd.f32 %v201_v4, %v184_v3  ;;  %v219_v6 = vpop.f32.mrf.mxu3  ;;  %v169_v8 = vadd.f32 %v258_v54, %v168_v7  ;;  %v186_v9 = vpop.f32.mrf.mxu1 }
  0xb3   :  { %v220_v10 = vadd.f32 %v219_v6, %v202_v5  ;;  %v187_v12 = vadd.f32 %v186_v9, %v169_v8 }
  0xb5   :  { %v227_v11 = vmax.f32 %v220_v10, 0.0 }
  0xb7   :  { %231 = vst.msk [vmem:[%s516_s3 + $0x8] sm:$0xff] %vm229_vm0, %v227_v11 }
  0xb8   :  { %v204_v13 = vpop.f32.mrf.mxu2  ;;  %v170_v16 = vpop.f32.mrf.mxu0 }
  0xb9   :  { %v205_v14 = vadd.f32 %v204_v13, %v187_v12  ;;  %v222_v15 = vpop.f32.mrf.mxu3  ;;  %v188_v17 = vpop.f32.mrf.mxu1 }
  0xbb   :  { %v223_v18 = vadd.f32 %v222_v15, %v205_v14 }
  0xbd   :  { %v228_v19 = vmax.f32 %v223_v18, 0.0 }
  0xbf   :  { %233 = vst.msk [vmem:[%s516_s3 + $0x10] sm:$0x3] %vm232_vm1, %v228_v19 }
  0xc0   :  { %v206_v20 = vpop.f32.mrf.mxu2 }
  0xc1   :  { %v224_v21 = vpop.f32.mrf.mxu3 }

// kernel: noisy_dqn_forward.8
= control target key start
LH: loop header
LB: loop body
LE: loop exit
PB: predicated region body
PF: predicated region fallthrough
CT: control target
= control target key end

     0   :  { %vm139_vm0 = vcmask 523264   ;;  %vm208_vm1 = vcmask 517120   ;;  %s461_s1 = inlined_call_operand.vmem [shape: f32[576,64], index: 1, kind: input, shape index: {}]   ;;  %s462_s0 = inlined_call_operand.vmem [shape: bf16[2,576], index: 0, kind: input, shape index: {}]   ;;  %s463_s2 = inlined_call_operand.vmem [shape: f32[1,64], index: 2, kind: input, shape index: {}]   ;;  %s464_s3 = inlined_call_operand.vmem [shape: f32[2,64], index: 3, kind: output, shape index: {}]  }
   0x1   :  { %v30_v0 = vld [vmem:[%s461_s1 + $0x70] sm:$0xff]  ;;  %v31_v1 = vld [vmem:[%s461_s1 + $0x78] sm:$0xff]  ;;  %v28_v11 = vld [vmem:[%s461_s1 + $0x60] sm:$0xff] }
   0x2   :  { %v62_v2 = vld [vmem:[%s461_s1 + $0x170] sm:$0xff]  ;;  %v95_v3 = vpack.c.bf16 %v31_v1, %v30_v0  ;;  %v63_v4 = vld [vmem:[%s461_s1 + $0x178] sm:$0xff]  ;;  %v29_v13 = vld [vmem:[%s461_s1 + $0x68] sm:$0xff] }
   0x3   :  { %v46_v5 = vld [vmem:[%s461_s1 + $0xf0] sm:$0xff]  ;;  %v47_v6 = vld [vmem:[%s461_s1 + $0xf8] sm:$0xff]  ;;  %v111_v7 = vpack.c.bf16 %v63_v4, %v62_v2  ;;  %v60_v14 = vld [vmem:[%s461_s1 + $0x160] sm:$0xff]  ;;  %v94_v16 = vpack.c.bf16 %v29_v13, %v28_v11 }
   0x4   :  { %v103_v8 = vpack.c.bf16 %v47_v6, %v46_v5  ;;  %v78_v9 = vld [vmem:[%s461_s1 + $0x1f0] sm:$0xff]  ;;  %v79_v10 = vld [vmem:[%s461_s1 + $0x1f8] sm:$0xff]  ;;  %142 = vmatpush.bf16.msra.mxu0 %v95_v3  ;;  %v61_v15 = vld [vmem:[%s461_s1 + $0x168] sm:$0xff] }
   0x5   :  { %v119_v12 = vpack.c.bf16 %v79_v10, %v78_v9  ;;  %168 = vmatpush.bf16.msra.mxu2 %v111_v7  ;;  %v110_v17 = vpack.c.bf16 %v61_v15, %v60_v14  ;;  %v44_v18 = vld [vmem:[%s461_s1 + $0xe0] sm:$0xff]  ;;  %v45_v19 = vld [vmem:[%s461_s1 + $0xe8] sm:$0xff]  ;;  %v26_v23 = vld [vmem:[%s461_s1 + $0x50] sm:$0xff] }
   0x6   :  { %155 = vmatpush.bf16.msra.mxu1 %v103_v8  ;;  %v76_v20 = vld [vmem:[%s461_s1 + $0x1e0] sm:$0xff]  ;;  %v102_v21 = vpack.c.bf16 %v45_v19, %v44_v18  ;;  %v77_v22 = vld [vmem:[%s461_s1 + $0x1e8] sm:$0xff]  ;;  %v27_v24 = vld [vmem:[%s461_s1 + $0x58] sm:$0xff] }
   0x7   :  { %181 = vmatpush.bf16.msra.mxu3 %v119_v12  ;;  %v118_v25 = vpack.c.bf16 %v77_v22, %v76_v20  ;;  %v58_v26 = vld [vmem:[%s461_s1 + $0x150] sm:$0xff]  ;;  %v59_v27 = vld [vmem:[%s461_s1 + $0x158] sm:$0xff]  ;;  %v93_v29 = vpack.c.bf16 %v27_v24, %v26_v23  ;;  %v24_v35 = vld [vmem:[%s461_s1 + $0x40] sm:$0xff] }
   0x8   :  { %v42_v28 = vld [vmem:[%s461_s1 + $0xd0] sm:$0xff]  ;;  %143 = vmatpush.bf16.msra.mxu0 %v94_v16  ;;  %v43_v30 = vld [vmem:[%s461_s1 + $0xd8] sm:$0xff]  ;;  %v109_v33 = vpack.c.bf16 %v59_v27, %v58_v26  ;;  %v25_v36 = vld [vmem:[%s461_s1 + $0x48] sm:$0xff] }
   0x9   :  { %v74_v31 = vld [vmem:[%s461_s1 + $0x1d0] sm:$0xff]  ;;  %v75_v32 = vld [vmem:[%s461_s1 + $0x1d8] sm:$0xff]  ;;  %169 = vmatpush.bf16.msra.mxu2 %v110_v17  ;;  %v101_v34 = vpack.c.bf16 %v43_v30, %v42_v28  ;;  %v56_v37 = vld [vmem:[%s461_s1 + $0x140] sm:$0xff]  ;;  %v92_v44 = vpack.c.bf16 %v25_v36, %v24_v35 }
   0xa   :  { %156 = vmatpush.bf16.msra.mxu1 %v102_v21  ;;  %v117_v38 = vpack.c.bf16 %v75_v32, %v74_v31  ;;  %v57_v39 = vld [vmem:[%s461_s1 + $0x148] sm:$0xff]  ;;  %v40_v40 = vld [vmem:[%s461_s1 + $0xc0] sm:$0xff]  ;;  %v22_v47 = vld [vmem:[%s461_s1 + $0x30] sm:$0xff] }
   0xb   :  { %182 = vmatpush.bf16.msra.mxu3 %v118_v25  ;;  %v41_v41 = vld [vmem:[%s461_s1 + $0xc8] sm:$0xff]  ;;  %v72_v42 = vld [vmem:[%s461_s1 + $0x1c0] sm:$0xff]  ;;  %v108_v45 = vpack.c.bf16 %v57_v39, %v56_v37  ;;  %v23_v48 = vld [vmem:[%s461_s1 + $0x38] sm:$0xff] }
   0xc   :  { %v73_v43 = vld [vmem:[%s461_s1 + $0x1c8] sm:$0xff]  ;;  %144 = vmatpush.bf16.msra.mxu0 %v93_v29  ;;  %v100_v46 = vpack.c.bf16 %v41_v41, %v40_v40  ;;  %v54_v49 = vld [vmem:[%s461_s1 + $0x130] sm:$0xff]  ;;  %v55_v51 = vld [vmem:[%s461_s1 + $0x138] sm:$0xff]  ;;  %v91_v56 = vpack.c.bf16 %v23_v48, %v22_v47 }
   0xd   :  { %170 = vmatpush.bf16.msra.mxu2 %v109_v33  ;;  %v116_v50 = vpack.c.bf16 %v73_v43, %v72_v42  ;;  %v38_v52 = vld [vmem:[%s461_s1 + $0xb0] sm:$0xff]  ;;  %v39_v53 = vld [vmem:[%s461_s1 + $0xb8] sm:$0xff]  ;;  %v107_v57 = vpack.c.bf16 %v55_v51, %v54_v49  ;;  %v20_v59 = vld [vmem:[%s461_s1 + $0x20] sm:$0xff] }
   0xe   :  { %157 = vmatpush.bf16.msra.mxu1 %v101_v34  ;;  %v70_v54 = vld [vmem:[%s461_s1 + $0x1b0] sm:$0xff]  ;;  %v71_v55 = vld [vmem:[%s461_s1 + $0x1b8] sm:$0xff]  ;;  %v99_v58 = vpack.c.bf16 %v39_v53, %v38_v52  ;;  %v21_v60 = vld [vmem:[%s461_s1 + $0x28] sm:$0xff] }
   0xf   :  { %183 = vmatpush.bf16.msra.mxu3 %v117_v38  ;;  %v52_v61 = vld [vmem:[%s461_s1 + $0x120] sm:$0xff]  ;;  %v115_v62 = vpack.c.bf16 %v71_v55, %v70_v54  ;;  %v53_v63 = vld [vmem:[%s461_s1 + $0x128] sm:$0xff]  ;;  %v90_v4 = vpack.c.bf16 %v21_v60, %v20_v59  ;;  %v18_v5 = vld [vmem:[%s461_s1 + $0x10] sm:$0xff] }
  0x10   :  { %145 = vmatpush.bf16.msra.mxu0 %v92_v44  ;;  %v36_v0 = vld [vmem:[%s461_s1 + $0xa0] sm:$0xff]  ;;  %v37_v1 = vld [vmem:[%s461_s1 + $0xa8] sm:$0xff]  ;;  %v106_v6 = vpack.c.bf16 %v53_v63, %v52_v61  ;;  %v19_v8 = vld [vmem:[%s461_s1 + $0x18] sm:$0xff] }
  0x11   :  { %171 = vmatpush.bf16.msra.mxu2 %v108_v45  ;;  %v68_v2 = vld [vmem:[%s461_s1 + $0x1a0] sm:$0xff]  ;;  %v69_v3 = vld [vmem:[%s461_s1 + $0x1a8] sm:$0xff]  ;;  %v98_v7 = vpack.c.bf16 %v37_v1, %v36_v0  ;;  %v50_v9 = vld [vmem:[%s461_s1 + $0x110] sm:$0xff]  ;;  %v89_v17 = vpack.c.bf16 %v19_v8, %v18_v5 }
  0x12   :  { %158 = vmatpush.bf16.msra.mxu1 %v100_v46  ;;  %v51_v10 = vld [vmem:[%s461_s1 + $0x118] sm:$0xff]  ;;  %v114_v11 = vpack.c.bf16 %v69_v3, %v68_v2  ;;  %v34_v12 = vld [vmem:[%s461_s1 + $0x90] sm:$0xff]  ;;  %v15_v14 = vld [vmem:[%s462_s0] sm:$0x1f] }
  0x13   :  { %184 = vmatpush.bf16.msra.mxu3 %v116_v50  ;;  %v35_v13 = vld [vmem:[%s461_s1 + $0x98] sm:$0xff]  ;;  %v66_v15 = vld [vmem:[%s461_s1 + $0x190] sm:$0xff]  ;;  %129 = vst [vmem:[#allocation1] ss:$9 sm:$0xff] %v15_v14  ;;  %v16_v18 = vld [vmem:[%s461_s1] sm:$0xff]  ;;  %v105_v20 = vpack.c.bf16 %v51_v10, %v50_v9 }
  0x14   :  { %146 = vmatpush.bf16.msra.mxu0 %v91_v56  ;;  %v67_v16 = vld [vmem:[%s461_s1 + $0x198] sm:$0xff]  ;;  %v17_v19 = vld [vmem:[%s461_s1 + $0x8] sm:$0xff]  ;;  %v97_v21 = vpack.c.bf16 %v35_v13, %v34_v12  ;;  %v48_v22 = vld [vmem:[%s461_s1 + $0x100] sm:$0xff] }
  0x15   :  { %172 = vmatpush.bf16.msra.mxu2 %v107_v57  ;;  %v49_v23 = vld [vmem:[%s461_s1 + $0x108] sm:$0xff]  ;;  %v113_v24 = vpack.c.bf16 %v67_v16, %v66_v15  ;;  %v32_v25 = vld [vmem:[%s461_s1 + $0x80] sm:$0xff]  ;;  %v86_v29 = vld [vmem:[%s461_s1 + $0x230] sm:$0xff]  ;;  %v88_v31 = vpack.c.bf16 %v17_v19, %v16_v18 }
  0x16   :  { %159 = vmatpush.bf16.msra.mxu1 %v99_v58  ;;  %v33_v26 = vld [vmem:[%s461_s1 + $0x88] sm:$0xff]  ;;  %v64_v27 = vld [vmem:[%s461_s1 + $0x180] sm:$0xff]  ;;  %v87_v30 = vld [vmem:[%s461_s1 + $0x238] sm:$0xff]  ;;  %v104_v32 = vpack.c.bf16 %v49_v23, %v48_v22 }
  0x17   :  { %185 = vmatpush.bf16.msra.mxu3 %v115_v62  ;;  %v65_v28 = vld [vmem:[%s461_s1 + $0x188] sm:$0xff]  ;;  %v96_v33 = vpack.c.bf16 %v33_v26, %v32_v25  ;;  %v123_v35 = vpack.c.bf16 %v87_v30, %v86_v29  ;;  %v84_v36 = vld [vmem:[%s461_s1 + $0x220] sm:$0xff]  ;;  %v82_v43 = vld [vmem:[%s461_s1 + $0x210] sm:$0xff] }
  0x18   :  { %147 = vmatpush.bf16.msra.mxu0 %v90_v4  ;;  %v112_v34 = vpack.c.bf16 %v65_v28, %v64_v27  ;;  %v85_v37 = vld [vmem:[%s461_s1 + $0x228] sm:$0xff]  ;;  %v83_v44 = vld [vmem:[%s461_s1 + $0x218] sm:$0xff]  ;;  %v80_v46 = vld [vmem:[%s461_s1 + $0x200] sm:$0xff] }
  0x19   :  { %173 = vmatpush.bf16.msra.mxu2 %v106_v6  ;;  %v122_v42 = vpack.c.bf16 %v85_v37, %v84_v36  ;;  %v121_v45 = vpack.c.bf16 %v83_v44, %v82_v43  ;;  %v81_v47 = vld [vmem:[%s461_s1 + $0x208] sm:$0xff]  ;;  %v215_v51 = vld [vmem:[%s463_s2] ss:$0 sm:$0xff] }
  0x1a   :  { %160 = vmatpush.bf16.msra.mxu1 %v98_v7  ;;  %v130_v38 = vld [vmem:[#allocation1] sm:$0xff]  ;;  %v132_v39 = vld [vmem:[#allocation1 + $0x12] sm:$0xff]  ;;  %v131_v40 = vld [vmem:[#allocation1 + $0x9] sm:$0xff]  ;;  %v120_v48 = vpack.c.bf16 %v81_v47, %v80_v46 }
  0x1b   :  { %186 = vmatpush.bf16.msra.mxu3 %v114_v11  ;;  %v133_v41 = vld [vmem:[#allocation1 + $0x1b] sm:$0xff]  ;;  %v134_v49 = vld [vmem:[#allocation1 + $0x24] sm:$0xff] }
  0x1c   :  { %148 = vmatpush.bf16.msra.mxu0 %v89_v17 }
  0x1d   :  { %174 = vmatpush.bf16.msra.mxu2 %v105_v20 }
  0x1e   :  { %161 = vmatpush.bf16.msra.mxu1 %v97_v21 }
  0x1f   :  { %187 = vmatpush.bf16.msra.mxu3 %v113_v24 }
  0x20   :  { %149 = vmatpush.bf16.msra.mxu0 %v88_v31 }
  0x21   :  { %175 = vmatpush.bf16.msra.mxu2 %v104_v32 }
  0x22   :  { %162 = vmatpush.bf16.msra.mxu1 %v96_v33 }
  0x23   :  { %188 = vmatpush.bf16.msra.mxu3 %v112_v34  ;;  %150 = vmatmul.bf16.vlgmr.msra.gmra.mxu0 %v130_v38 }
  0x24   :  { %198 = vmatpush.bf16.msrb.mxu0 %v123_v35  ;;  %176 = vmatmul.bf16.vlgmr.msra.gmra.mxu2 %v132_v39 }
  0x25   :  { %163 = vmatmul.bf16.vlgmr.msra.gmra.mxu1 %v131_v40 }
  0x26   :  { %189 = vmatmul.bf16.vlgmr.msra.gmra.mxu3 %v133_v41 }
  0x28   :  { %199 = vmatpush.bf16.msrb.mxu0 %v122_v42 }
  0x2c   :  { %200 = vmatpush.bf16.msrb.mxu0 %v121_v45 }
  0x30   :  { %201 = vmatpush.bf16.msrb.mxu0 %v120_v48 }
  0x33   :  { %214 = vmatmul.msk.bf16.vlgmr.msrb.gmra.mxu0 %vm139_vm0, %v134_v49 }
  0xa0   :  { %v151_v50 = vpop.f32.mrf.mxu0 }
  0xa1   :  { %v152_v53 = vadd.f32 %v215_v51, %v151_v50 }
  0xa2   :  { %v164_v52 = vpop.f32.mrf.mxu1 }
  0xa3   :  { %v165_v57 = vadd.f32 %v164_v52, %v152_v53 }
  0xa7   :  { %v177_v54 = vpop.f32.mrf.mxu2 }
  0xa8   :  { %v153_v55 = vpop.f32.mrf.mxu0  ;;  %v178_v59 = vadd.f32 %v177_v54, %v165_v57 }
  0xa9   :  { %v190_v56 = vpop.f32.mrf.mxu3 }
  0xaa   :  { %v166_v58 = vpop.f32.mrf.mxu1  ;;  %v191_v60 = vadd.f32 %v190_v56, %v178_v59 }
  0xaf   :  { %v179_v61 = vpop.f32.mrf.mxu2 }
  0xb0   :  { %v203_v63 = vpop.f32.mrf.mxu0 }
  0xb1   :  { %v192_v62 = vpop.f32.mrf.mxu3  ;;  %v204_v0 = vadd.f32 %v203_v63, %v191_v60 }
  0xb3   :  { %v207_v1 = vmax.f32 %v204_v0, 0.0 }
  0xb5   :  { %209 = vst.msk [vmem:[%s464_s3] sm:$0x3] %vm208_vm1, %v207_v1 }
  0xb8   :  { %v205_v2 = vpop.f32.mrf.mxu0 }

// kernel: noisy_dqn_forward.9
= control target key start
LH: loop header
LB: loop body
LE: loop exit
PB: predicated region body
PF: predicated region fallthrough
CT: control target
= control target key end

     0   :  { %s1596_s0 = inlined_call_operand.vmem [shape: f32[2,64], index: 0, kind: input, shape index: {}]   ;;  %s1597_s1 = inlined_call_operand.vmem [shape: f32[64,512], index: 1, kind: input, shape index: {}]   ;;  %s1598_s2 = inlined_call_operand.vmem [shape: bf16[64,512], index: 2, kind: input, shape index: {}]   ;;  %s1599_s3 = inlined_call_operand.vmem [shape: f32[1,512], index: 3, kind: input, shape index: {}]   ;;  %s1600_s4 = inlined_call_operand.vmem [shape: f32[512,128], index: 4, kind: input, shape index: {}]   ;;  %s1601_s5 = inlined_call_operand.vmem [shape: bf16[512,128], index: 5, kind: input, shape index: {}]   ;;  %s1602_s6 = inlined_call_operand.vmem [shape: f32[1,128], index: 6, kind: input, shape index: {}]   ;;  %s1603_s7 = inlined_call_operand.<no memory space> [shape: f32[1,1], index: 7, kind: input, shape index: {}]   ;;  %s1604_s9 = inlined_call_operand.hbm [shape: f32[2,128], index: 9, kind: output, shape index: {}]   ;;  %s1605_s8 = inlined_call_operand.<no memory space> [shape: f32[1,1], index: 8, kind: input, shape index: {}]  }
   0x1   :  { %v14_v0 = vstv %s1603_s7  ;;  %v16_v1 = vstv %s1605_s8 }
   0x2   :  { %15 = vst [vmem:[#allocation3] sm:$0x1] %v14_v0 }
   0x3   :  { %17 = vst [vmem:[#allocation4] sm:$0x1] %v16_v1 }
   0x4   :  { %18 = vsyncpa [#allocation8], 0  ;;  %s1243_s13 = smov 0   ;;  %s1245_s14 = smov 0  }
   0x5   :  { %s1247_s15 = smov 0  }
   0x6 LB: > { %s1259_s7 = sadd.s32 4294967295, %s1182_s15   ;;  %s1262_s8 = sadd.s32 1, %s1182_s15   ;;  %s1182_s15 = sphi %s1247_s15, %s1613_s15   ;;  %s1178_s14 = sphi %s1245_s14, %s1612_s14   ;;  %s1174_s13 = sphi %s1243_s13, %s1611_s13  }
   0x7   : > { %s49_s16 = ssub.s32 %s1182_s15, %s1262_s8  ;;  %s52_s17 = sadd.s32 1, %s1178_s14 }
   0x8   : > { %p50_p0 = scmp.eq.s32.totalorder %s49_s16, 0  ;;  %p59_p1 = scmp.ne.s32.totalorder %s1178_s14, %s1174_s13 }
   0x9   : > { %p60_p2 = scmp.eq.s32.totalorder %s1182_s15, 0  ;;  %p987_p4 = scmp.ge.s32.totalorder %s1182_s15, 2 }
   0xa   : > { %s1271_s18 = scalar_select %p50_p0, %s1178_s14, %s52_s17  }
   0xb   : > { %p1273_p3 = por %p60_p2, %p59_p1  ;;  %285 = sbr.rel (%p987_p4) target bundleno = 48 (0x30), region = 32 }
  0x10   : > { %288 = sbr.rel (!%p1273_p3) target bundleno = 36 (0x24), region = 36  ;;  %s290_s20 = sand.u32 (%p1273_p3), 1, %s1178_s14  }
  0x11   : > { %s1010_s21 = sshll.u32 (%p1273_p3), %s1182_s15, 4  ;;  %s988_s22 = sshll.u32 (%p1273_p3), %s290_s20, 7 }
  0x12   : > { %s1285_s25 = scalar_lea.vmem (%p1273_p3), %s1597_s1, %s1010_s21  ;;  %s292_s26 = scalar_lea.vmem (%p1273_p3), [#allocation5], %s988_s22 }
  0x13   : > { %v308_v2 = vld [vmem:[%s1285_s25] sm:$0xff] (%p1273_p3)  ;;  %v310_v3 = vld [vmem:[%s1285_s25 + $0x8] sm:$0xff] (%p1273_p3) }
  0x14   : > { %v312_v4 = vld [vmem:[%s1285_s25 + $0x20] sm:$0xff] (%p1273_p3)  ;;  %309 = vst [vmem:[%s292_s26] sm:$0xff] (%p1273_p3), %v308_v2  ;;  %v314_v5 = vld [vmem:[%s1285_s25 + $0x28] sm:$0xff] (%p1273_p3) }
  0x15   : > { %311 = vst [vmem:[%s292_s26 + $0x8] sm:$0xff] %v310_v3  ;;  %v316_v6 = vld [vmem:[%s1285_s25 + $0x40] sm:$0xff]  ;;  %v318_v7 = vld [vmem:[%s1285_s25 + $0x48] sm:$0xff] }
  0x16   : > { %313 = vst [vmem:[%s292_s26 + $0x10] sm:$0xff] %v312_v4  ;;  %v320_v8 = vld [vmem:[%s1285_s25 + $0x60] sm:$0xff]  ;;  %v322_v9 = vld [vmem:[%s1285_s25 + $0x68] sm:$0xff] }
  0x17   : > { %315 = vst [vmem:[%s292_s26 + $0x18] sm:$0xff] %v314_v5  ;;  %v324_v10 = vld [vmem:[%s1285_s25 + $0x80] sm:$0xff]  ;;  %v326_v11 = vld [vmem:[%s1285_s25 + $0x88] sm:$0xff] }
  0x18   : > { %317 = vst [vmem:[%s292_s26 + $0x20] sm:$0xff] %v316_v6  ;;  %v328_v12 = vld [vmem:[%s1285_s25 + $0xa0] sm:$0xff]  ;;  %v330_v13 = vld [vmem:[%s1285_s25 + $0xa8] sm:$0xff] }
  0x19   : > { %319 = vst [vmem:[%s292_s26 + $0x28] sm:$0xff] %v318_v7  ;;  %v332_v14 = vld [vmem:[%s1285_s25 + $0xc0] sm:$0xff]  ;;  %v334_v15 = vld [vmem:[%s1285_s25 + $0xc8] sm:$0xff] }
  0x1a   : > { %321 = vst [vmem:[%s292_s26 + $0x30] sm:$0xff] %v320_v8  ;;  %v336_v16 = vld [vmem:[%s1285_s25 + $0xe0] sm:$0xff]  ;;  %v338_v17 = vld [vmem:[%s1285_s25 + $0xe8] sm:$0xff] }
  0x1b   : > { %323 = vst [vmem:[%s292_s26 + $0x38] sm:$0xff] %v322_v9 }
  0x1c   : > { %325 = vst [vmem:[%s292_s26 + $0x40] sm:$0xff] %v324_v10 }
  0x1d   : > { %327 = vst [vmem:[%s292_s26 + $0x48] sm:$0xff] %v326_v11 }
  0x1e   : > { %329 = vst [vmem:[%s292_s26 + $0x50] sm:$0xff] %v328_v12 }
  0x1f   : > { %331 = vst [vmem:[%s292_s26 + $0x58] sm:$0xff] %v330_v13 }
  0x20   : > { %333 = vst [vmem:[%s292_s26 + $0x60] sm:$0xff] %v332_v14 }
  0x21   : > { %335 = vst [vmem:[%s292_s26 + $0x68] sm:$0xff] %v334_v15 }
  0x22   : > { %337 = vst [vmem:[%s292_s26 + $0x70] sm:$0xff] %v336_v16 }
  0x23   : > { %339 = vst [vmem:[%s292_s26 + $0x78] sm:$0xff] %v338_v17 }
  0x24 PF: > { %345 = sbr.rel (!%p1273_p3) target bundleno = 48 (0x30), region = 59  ;;  %s347_s27 = sand.u32 (%p1273_p3), 1, %s1178_s14  }
  0x25   : > { %s1011_s28 = sshll.u32 (%p1273_p3), %s1182_s15, 3  ;;  %s991_s29 = sshll.u32 (%p1273_p3), %s347_s27, 6 }
  0x26   : > { %s352_s11 = scalar_lea.vmem (%p1273_p3), %s1598_s2, %s1011_s28  ;;  %s349_s12 = scalar_lea.vmem (%p1273_p3), [#allocation6], %s991_s29 }
  0x27   : > { %v395_v18 = vld [vmem:[%s352_s11] sm:$0xff] (%p1273_p3)  ;;  %v397_v19 = vld [vmem:[%s352_s11 + $0x10] sm:$0xff] (%p1273_p3) }
  0x28   : > { %v399_v20 = vld [vmem:[%s352_s11 + $0x20] sm:$0xff] (%p1273_p3)  ;;  %396 = vst [vmem:[%s349_s12] sm:$0xff] (%p1273_p3), %v395_v18  ;;  %v401_v21 = vld [vmem:[%s352_s11 + $0x30] sm:$0xff] (%p1273_p3) }
  0x29   : > { %398 = vst [vmem:[%s349_s12 + $0x8] sm:$0xff] %v397_v19  ;;  %v403_v22 = vld [vmem:[%s352_s11 + $0x40] sm:$0xff]  ;;  %v405_v23 = vld [vmem:[%s352_s11 + $0x50] sm:$0xff] }
  0x2a   : > { %400 = vst [vmem:[%s349_s12 + $0x10] sm:$0xff] %v399_v20  ;;  %v407_v24 = vld [vmem:[%s352_s11 + $0x60] sm:$0xff]  ;;  %v409_v25 = vld [vmem:[%s352_s11 + $0x70] sm:$0xff] }
  0x2b   : > { %402 = vst [vmem:[%s349_s12 + $0x18] sm:$0xff] %v401_v21 }
  0x2c   : > { %404 = vst [vmem:[%s349_s12 + $0x20] sm:$0xff] %v403_v22 }
  0x2d   : > { %406 = vst [vmem:[%s349_s12 + $0x28] sm:$0xff] %v405_v23 }
  0x2e   : > { %408 = vst [vmem:[%s349_s12 + $0x30] sm:$0xff] %v407_v24 }
  0x2f   : > { %410 = vst [vmem:[%s349_s12 + $0x38] sm:$0xff] %v409_v25 }
  0x30 PF: > { %p994_p5 = scmp.ge.s32.totalorder %s1182_s15, 1  ;;  %p441_p6 = scmp.lt.s32.totalorder %s1182_s15, 3 }
  0x32   : > { %p442_p7 = pnand %p994_p5, %p441_p6 }
  0x33   : > { %s448_s16 = sand.u32 (!%p442_p7), 1, %s1174_s13   ;;  %s997_s17 = sshll.u32 (!%p442_p7), %s1259_s7, 1 }
  0x34   : > { %445 = sbr.rel (%p442_p7) target bundleno = 489 (0x1e9), region = 109  ;;  %s995_s19 = sshll.u32 (!%p442_p7), %s448_s16, 7 }
  0x35   : > { %s996_s20 = sshll.u32 (!%p442_p7), %s448_s16, 6  ;;  %p506_p8 = scmp.lt.s32.totalorder (!%p442_p7), %s997_s17, 3 }
  0x36   : > { %s998_s21 = sshll.u32 (!%p442_p7), %s1259_s7, 5  ;;  %s1331_s10 = scalar_lea.vmem (!%p442_p7), [#allocation5], %s995_s19 }
  0x37   : > { %p511_p9 = scmp.lt.s32.totalorder (!%p442_p7), %s998_s21, 63  ;;  %s457_s11 = scalar_lea.vmem (!%p442_p7), [#allocation6], %s996_s20 }
  0x38   : > { %p1002_p10 = scmp.ne.s32.totalorder (!%p442_p7), %s1259_s7, 0 }
  0x39   : > { %s1615_s17 = smov (!%p506_p8, %s997_s17), 3  ;;  %s1617_s21 = smov (!%p511_p9, %s998_s21), 63 }
  0x3a   : > { %s508_s15 = scalar_lea.vmem %s1599_s3, %s1615_s17  ;;  %s999_s24 = sshll.u32 %s1617_s21, 3 }
  0x3b   : > { %s1001_s25 = sshll.u32 %s1617_s21, 2  ;;  %s1324_s13 = scalar_lea.vmem %s1600_s4, %s999_s24 }
  0x3c   : > { %s1329_s30 = scalar_lea.vmem %s1601_s5, %s1001_s25  ;;  %526 = sbr.rel (%p1002_p10) target bundleno = 67 (0x43), region = 121 }
  0x41   : > { %v1184_v26 = vmov 0.0  }
  0x42   : > { %527 = vst [vmem:[#allocation2] sm:$0x3] %v1184_v26 }
  0x43 PF: > { %v1125_v27 = vld [vmem:[#allocation3] ss:$0 sm:$0xff]  ;;  %v1185_v28 = vmov 0   ;;  %v1126_v29 = vld [vmem:[#allocation4] ss:$0 sm:$0xff]  ;;  %v551_v30 = vld [vmem:[%s457_s11 + $0x30] sm:$0xff] }
  0x44   : > { %1124 = vset.pattern.permute.xlu0 %v1185_v28  ;;  %v552_v31 = vld [vmem:[%s457_s11 + $0x38] sm:$0xff]  ;;  %v1334_v32 = vld [vmem:[%s457_s11 + $0x20] sm:$0xff]  ;;  %v1336_v33 = vld [vmem:[%s457_s11 + $0x28] sm:$0xff]  ;;  %v565_v35 = vunpack.c.l.bf16 %v551_v30  ;;  %v566_v39 = vunpack.c.h.bf16 %v551_v30  ;;  %vm623_vm0 = vcmask 523264   ;;  %p1005_p11 = scmp.ne.s32.totalorder %s1259_s7, 1 }
  0x45   : > { %572 = vperm.xlu0 %1124, %v1125_v27   ;;  %v1338_v34 = vld [vmem:[%s457_s11 + $0x10] sm:$0xff]  ;;  %v1340_v36 = vld [vmem:[%s457_s11 + $0x18] sm:$0xff]  ;;  %v1342_v37 = vld [vmem:[%s457_s11] sm:$0xff]  ;;  %v567_v38 = vunpack.c.l.bf16 %v552_v31  ;;  %v568_v40 = vunpack.c.h.bf16 %v552_v31  ;;  %v561_v41 = vunpack.c.l.bf16 %v1334_v32  ;;  %v563_v44 = vunpack.c.l.bf16 %v1336_v33 }
  0x46   : > { %v1346_v42 = vld [vmem:[%s1329_s30 + $0x38] sm:$0xff]   ;;  %v1348_v43 = vld [vmem:[%s457_s11 + $0x8] sm:$0xff]  ;;  %v562_v45 = vunpack.c.h.bf16 %v1334_v32  ;;  %v564_v46 = vunpack.c.h.bf16 %v1336_v33  ;;  %v557_v47 = vunpack.c.l.bf16 %v1338_v34  ;;  %v559_v50 = vunpack.c.l.bf16 %v1340_v36  ;;  %v1378_v61 = vld [vmem:[%s1329_s30 + $0x20] sm:$0xff]  }
  0x47   : > { %v1355_v48 = vld [vmem:[%s1329_s30 + $0x78] sm:$0xff]   ;;  %v1358_v49 = vld [vmem:[%s1329_s30 + $0x30] sm:$0xff]   ;;  %v558_v51 = vunpack.c.h.bf16 %v1338_v34  ;;  %v560_v52 = vunpack.c.h.bf16 %v1340_v36  ;;  %v553_v53 = vunpack.c.l.bf16 %v1342_v37  ;;  %v1368_v55 = vld [vmem:[%s1329_s30 + $0x28] sm:$0xff]   ;;  %v1042_v56 = vunpack.c.l.bf16 %v1346_v42 }
  0x48   : > { %v1365_v54 = vld [vmem:[%s1329_s30 + $0x70] sm:$0xff]   ;;  %v555_v57 = vunpack.c.l.bf16 %v1348_v43  ;;  %v554_v58 = vunpack.c.h.bf16 %v1342_v37  ;;  %v556_v59 = vunpack.c.h.bf16 %v1348_v43  ;;  %v1375_v60 = vld [vmem:[%s1329_s30 + $0x68] sm:$0xff]   ;;  %v1043_v62 = vunpack.c.h.bf16 %v1346_v42  ;;  %v607_v2 = vld [vmem:[%s1596_s0] sm:$0x3] }
  0x49   : > { %v1074_v63 = vunpack.c.l.bf16 %v1355_v48  ;;  %v1075_v0 = vunpack.c.h.bf16 %v1355_v48  ;;  %v1038_v1 = vunpack.c.l.bf16 %v1358_v49  ;;  %v1388_v3 = vld [vmem:[%s1329_s30 + $0x60] sm:$0xff]   ;;  %v1039_v4 = vunpack.c.h.bf16 %v1358_v49  ;;  %v542_v9 = vld [vmem:[%s1331_s10 + $0x70] sm:$0xff]  ;;  %v541_v15 = vld [vmem:[%s1331_s10 + $0x68] sm:$0xff] }
  0x4a   : > { %v1070_v5 = vunpack.c.l.bf16 %v1365_v54  ;;  %v1071_v6 = vunpack.c.h.bf16 %v1365_v54  ;;  %v1034_v7 = vunpack.c.l.bf16 %v1368_v55  ;;  %v540_v8 = vld [vmem:[%s1331_s10 + $0x60] sm:$0xff]  ;;  %v1035_v10 = vunpack.c.h.bf16 %v1368_v55  ;;  %v543_v16 = vld [vmem:[%s1331_s10 + $0x78] sm:$0xff]  ;;  %v538_v26 = vld [vmem:[%s1331_s10 + $0x50] sm:$0xff] }
  0x4b   : > { %v1066_v11 = vunpack.c.l.bf16 %v1375_v60  ;;  %v1067_v12 = vunpack.c.h.bf16 %v1375_v60  ;;  %v536_v17 = vld [vmem:[%s1331_s10 + $0x40] sm:$0xff]  ;;  %v1405_v18 = vpack.c.bf16 %v607_v2, %v607_v2  ;;  %v537_v27 = vld [vmem:[%s1331_s10 + $0x48] sm:$0xff]  ;;  %v539_v28 = vld [vmem:[%s1331_s10 + $0x58] sm:$0xff] }
  0x4c   : > { %v532_v19 = vld [vmem:[%s1331_s10 + $0x20] sm:$0xff]  ;;  %v534_v13 = vld [vmem:[%s1331_s10 + $0x30] sm:$0xff] }
  0x4d   : > { %755 = vperm.xlu0 %1124, %v1126_v29  }
  0xb7   : > { %v1400_v14 = vpop.permute.xlu0 %572 }
  0xb8   : > { %v587_v22 = vmul.f32 %v1400_v14, %v565_v35  ;;  %v589_v23 = vmul.f32 %v1400_v14, %v567_v38  ;;  %v588_v24 = vmul.f32 %v1400_v14, %v566_v39  ;;  %v590_v25 = vmul.f32 %v1400_v14, %v568_v40 }
  0xb9   : > { %v583_v29 = vmul.f32 %v1400_v14, %v561_v41  ;;  %v585_v30 = vmul.f32 %v1400_v14, %v563_v44  ;;  %v584_v31 = vmul.f32 %v1400_v14, %v562_v45  ;;  %v586_v32 = vmul.f32 %v1400_v14, %v564_v46  ;;  %v1424_v41 = vld [vmem:[%s1329_s30 + $0x18] sm:$0xff]  }
  0xba   : > { %v603_v33 = vadd.f32 %v587_v22, %v540_v8  ;;  %v605_v35 = vadd.f32 %v589_v23, %v542_v9  ;;  %v604_v38 = vadd.f32 %v588_v24, %v541_v15  ;;  %v606_v39 = vadd.f32 %v590_v25, %v543_v16  ;;  %v533_v9 = vld [vmem:[%s1331_s10 + $0x28] sm:$0xff]  ;;  %v535_v15 = vld [vmem:[%s1331_s10 + $0x38] sm:$0xff]  ;;  %v530_v25 = vld [vmem:[%s1331_s10 + $0x10] sm:$0xff] }
  0xbb   : > { %v599_v40 = vadd.f32 %v583_v29, %v536_v17  ;;  %v601_v2 = vadd.f32 %v585_v30, %v538_v26  ;;  %v600_v21 = vadd.f32 %v584_v31, %v537_v27  ;;  %v602_v20 = vadd.f32 %v586_v32, %v539_v28  ;;  %v669_v26 = vld [vmem:[%s1324_s13 + $0x70] sm:$0xff]  ;;  %v686_v30 = vld [vmem:[%s1324_s13 + $0xf8] sm:$0xff] }
  0xbc   : > { %v615_v44 = vpack.c.bf16 %v605_v35, %v603_v33  ;;  %v616_v45 = vpack.c.bf16 %v606_v39, %v604_v38  ;;  %v579_v46 = vmul.f32 %v1400_v14, %v557_v47  ;;  %v581_v8 = vmul.f32 %v1400_v14, %v559_v50  ;;  %v528_v50 = vld [vmem:[%s1331_s10] sm:$0xff]  ;;  %v685_v27 = vld [vmem:[%s1324_s13 + $0xf0] sm:$0xff]  ;;  %v531_v35 = vld [vmem:[%s1331_s10 + $0x18] sm:$0xff] }
  0xbd   : > { %v613_v16 = vpack.c.bf16 %v601_v2, %v599_v40  ;;  %v614_v17 = vpack.c.bf16 %v602_v20, %v600_v21  ;;  %v580_v22 = vmul.f32 %v1400_v14, %v558_v51  ;;  %v582_v23 = vmul.f32 %v1400_v14, %v560_v52  ;;  %v670_v52 = vld [vmem:[%s1324_s13 + $0x78] sm:$0xff]  ;;  %v529_v31 = vld [vmem:[%s1331_s10 + $0x8] sm:$0xff]  ;;  %v667_v38 = vld [vmem:[%s1324_s13 + $0x60] sm:$0xff] }
  0xbe   : > { %631 = vmatpush.bf16.msra.mxu0 %v615_v44  ;;  %644 = vmatpush.bf16.msra.mxu1 %v616_v45  ;;  %v595_v47 = vadd.f32 %v579_v46, %v532_v19  ;;  %v597_v24 = vadd.f32 %v581_v8, %v534_v13  ;;  %v575_v20 = vmul.f32 %v1400_v14, %v553_v53  ;;  %v1026_v34 = vunpack.c.l.bf16 %v1424_v41  ;;  %v668_v2 = vld [vmem:[%s1324_s13 + $0x68] sm:$0xff]  ;;  %v683_v44 = vld [vmem:[%s1324_s13 + $0xe0] sm:$0xff]  ;;  %v1478_v45 = vld [vmem:[%s1329_s30 + $0x58] sm:$0xff]  }
  0xbf   : > { %v1444_v21 = vpop.permute.xlu0 %755  ;;  %v596_v51 = vadd.f32 %v580_v22, %v533_v9  ;;  %v598_v36 = vadd.f32 %v582_v23, %v535_v15  ;;  %v577_v13 = vmul.f32 %v1400_v14, %v555_v57  ;;  %v576_v19 = vmul.f32 %v1400_v14, %v554_v58  ;;  %v684_v15 = vld [vmem:[%s1324_s13 + $0xe8] sm:$0xff] }
  0xc0   : > { %v611_v28 = vpack.c.bf16 %v597_v24, %v595_v47  ;;  %v772_v53 = vmul.f32 %v1042_v56, %v1444_v21  ;;  %v773_v29 = vmul.f32 %v1043_v62, %v1444_v21  ;;  %v788_v57 = vmul.f32 %v1074_v63, %v1444_v21  ;;  %v681_v47 = vld [vmem:[%s1324_s13 + $0xd0] sm:$0xff]  ;;  %v682_v24 = vld [vmem:[%s1324_s13 + $0xd8] sm:$0xff] }
  0xc1   : > { %v612_v37 = vpack.c.bf16 %v598_v36, %v596_v51  ;;  %v789_v58 = vmul.f32 %v1075_v0, %v1444_v21  ;;  %v591_v32 = vadd.f32 %v575_v20, %v528_v50  ;;  %v593_v33 = vadd.f32 %v577_v13, %v530_v25  ;;  %v1077_v25 = vld [vmem:[%s1329_s30 + $0x10] sm:$0xff]   ;;  %v664_v13 = vld [vmem:[%s1324_s13 + $0x48] sm:$0xff] }
  0xc2   : > { %632 = vmatpush.bf16.msra.mxu0 %v613_v16  ;;  %645 = vmatpush.bf16.msra.mxu1 %v614_v17  ;;  %v804_v42 = vadd.f32 %v772_v53, %v669_v26  ;;  %v805_v56 = vadd.f32 %v773_v29, %v670_v52  ;;  %v820_v62 = vadd.f32 %v788_v57, %v685_v27  ;;  %v1027_v63 = vunpack.c.h.bf16 %v1424_v41  ;;  %v665_v17 = vld [vmem:[%s1324_s13 + $0x50] sm:$0xff]  ;;  %v663_v52 = vld [vmem:[%s1324_s13 + $0x40] sm:$0xff] }
  0xc3   : > { %v821_v39 = vadd.f32 %v789_v58, %v686_v30  ;;  %v609_v48 = vpack.c.bf16 %v593_v33, %v591_v32  ;;  %v578_v0 = vmul.f32 %v1400_v14, %v556_v59  ;;  %v592_v40 = vadd.f32 %v576_v19, %v529_v31  ;;  %v1085_v27 = vld [vmem:[%s1329_s30 + $0x50] sm:$0xff]  }
  0xc4   : > { %v832_v46 = vpack.c.bf16 %v805_v56, %v804_v42  ;;  %v770_v8 = vmul.f32 %v1038_v1, %v1444_v21  ;;  %v771_v9 = vmul.f32 %v1039_v4, %v1444_v21  ;;  %v786_v43 = vmul.f32 %v1070_v5, %v1444_v21  ;;  %v666_v5 = vld [vmem:[%s1324_s13 + $0x58] sm:$0xff]  ;;  %v1076_v42 = vld [vmem:[%s1329_s30 + $0x8] sm:$0xff]  }
  0xc5   : > { %v840_v59 = vpack.c.bf16 %v821_v39, %v820_v62  ;;  %v594_v14 = vadd.f32 %v578_v0, %v531_v35  ;;  %v787_v16 = vmul.f32 %v1071_v6, %v1444_v21  ;;  %v768_v1 = vmul.f32 %v1034_v7, %v1444_v21 }
  0xc6   : > { %633 = vmatpush.bf16.msra.mxu0 %v611_v28  ;;  %646 = vmatpush.bf16.msra.mxu1 %v612_v37  ;;  %v802_v49 = vadd.f32 %v770_v8, %v667_v38  ;;  %v803_v4 = vadd.f32 %v771_v9, %v668_v2  ;;  %v818_v22 = vadd.f32 %v786_v43, %v683_v44  ;;  %v1058_v23 = vunpack.c.l.bf16 %v1478_v45  ;;  %v662_v2 = vld [vmem:[%s1324_s13 + $0x38] sm:$0xff] }
  0xc7   : > { %841 = vmatpush.bf16.msra.mxu2 %v832_v46  ;;  %854 = vmatpush.bf16.msra.mxu3 %v840_v59  ;;  %v610_v54 = vpack.c.bf16 %v594_v14, %v592_v40  ;;  %v819_v6 = vadd.f32 %v787_v16, %v684_v15  ;;  %v769_v7 = vmul.f32 %v1035_v10, %v1444_v21  ;;  %v1059_v50 = vunpack.c.h.bf16 %v1478_v45  ;;  %v661_v40 = vld [vmem:[%s1324_s13 + $0x30] sm:$0xff]  ;;  %v678_v8 = vld [vmem:[%s1324_s13 + $0xb8] sm:$0xff]  ;;  %v1013_v14 = vld [vmem:[%s1329_s30] sm:$0xff]  }
  0xc8   : > { %v831_v20 = vpack.c.bf16 %v803_v4, %v802_v49  ;;  %v800_v51 = vadd.f32 %v768_v1, %v665_v17  ;;  %v784_v36 = vmul.f32 %v1066_v11, %v1444_v21  ;;  %v785_v26 = vmul.f32 %v1067_v12, %v1444_v21  ;;  %v679_v12 = vld [vmem:[%s1324_s13 + $0xc0] sm:$0xff]  ;;  %v660_v4 = vld [vmem:[%s1324_s13 + $0x28] sm:$0xff] }
  0xc9   : > { %v839_v55 = vpack.c.bf16 %v819_v6, %v818_v22  ;;  %v801_v10 = vadd.f32 %v769_v7, %v666_v5  ;;  %v1607_v19 = vunpack.c.l.bf16 %v1378_v61  ;;  %v1608_v53 = vunpack.c.h.bf16 %v1378_v61  ;;  %v680_v61 = vld [vmem:[%s1324_s13 + $0xc8] sm:$0xff]  ;;  %v659_v49 = vld [vmem:[%s1324_s13 + $0x20] sm:$0xff] }
  0xca   : > { %634 = vmatpush.bf16.msra.mxu0 %v609_v48  ;;  %647 = vmatpush.bf16.msra.mxu1 %v610_v54  ;;  %v816_v11 = vadd.f32 %v784_v36, %v681_v47  ;;  %v817_v60 = vadd.f32 %v785_v26, %v682_v24  ;;  %v1609_v30 = vunpack.c.l.bf16 %v1388_v3  ;;  %v1022_v31 = vunpack.c.l.bf16 %v1077_v25  ;;  %v1084_v48 = vld [vmem:[%s1329_s30 + $0x48] sm:$0xff]   ;;  %v1083_v5 = vld [vmem:[%s1329_s30 + $0x40] sm:$0xff]  }
  0xcb   : > { %v766_v28 = vmul.f32 %v1607_v19, %v1444_v21  ;;  %v767_v29 = vmul.f32 %v1608_v53, %v1444_v21  ;;  %842 = vmatpush.bf16.msra.mxu2 %v831_v20  ;;  %855 = vmatpush.bf16.msra.mxu3 %v839_v55  ;;  %v830_v37 = vpack.c.bf16 %v801_v10, %v800_v51  ;;  %v1023_v32 = vunpack.c.h.bf16 %v1077_v25  ;;  %v675_v7 = vld [vmem:[%s1324_s13 + $0xa0] sm:$0xff]  ;;  %v676_v47 = vld [vmem:[%s1324_s13 + $0xa8] sm:$0xff]  ;;  %v657_v55 = vld [vmem:[%s1324_s13 + $0x10] sm:$0xff] }
  0xcc   : > { %v782_v57 = vmul.f32 %v1609_v30, %v1444_v21  ;;  %v1054_v33 = vunpack.c.l.bf16 %v1085_v27  ;;  %v838_v56 = vpack.c.bf16 %v817_v60, %v816_v11  ;;  %v1610_v35 = vunpack.c.h.bf16 %v1388_v3  ;;  %v658_v53 = vld [vmem:[%s1324_s13 + $0x18] sm:$0xff] }
  0xcd   : > { %v798_v58 = vadd.f32 %v766_v28, %v663_v52  ;;  %v799_v62 = vadd.f32 %v767_v29, %v664_v13  ;;  %v764_v39 = vmul.f32 %v1026_v34, %v1444_v21  ;;  %1003 = vmatmul.msk.bf16.vlgmr.msra.gmra.mxu0 %vm623_vm0, %v1405_v18  ;;  %1004 = vmatmul.msk.bf16.vlgmr.msra.gmra.mxu1 %vm623_vm0, %v1405_v18  ;;  %v1055_v45 = vunpack.c.h.bf16 %v1085_v27  ;;  %v677_v34 = vld [vmem:[%s1324_s13 + $0xb0] sm:$0xff] }
  0xce   : > { %v783_v38 = vmul.f32 %v1610_v35, %v1444_v21  ;;  %v814_v0 = vadd.f32 %v782_v57, %v679_v12  ;;  %v765_v3 = vmul.f32 %v1027_v63, %v1444_v21  ;;  %v780_v44 = vmul.f32 %v1058_v23, %v1444_v21  ;;  %v673_v29 = vld [vmem:[%s1324_s13 + $0x90] sm:$0xff]  ;;  %v674_v12 = vld [vmem:[%s1324_s13 + $0x98] sm:$0xff]  ;;  %v656_v35 = vld [vmem:[%s1324_s13 + $0x8] sm:$0xff] }
  0xcf   : > { %v781_v9 = vmul.f32 %v1059_v50, %v1444_v21  ;;  %v1018_v18 = vunpack.c.l.bf16 %v1076_v42  ;;  %v1019_v15 = vunpack.c.h.bf16 %v1076_v42  ;;  %843 = vmatpush.bf16.msra.mxu2 %v830_v37  ;;  %856 = vmatpush.bf16.msra.mxu3 %v838_v56  ;;  %v762_v41 = vmul.f32 %v1022_v31, %v1444_v21 }
  0xd0   : > { %v815_v46 = vadd.f32 %v783_v38, %v680_v61  ;;  %v763_v63 = vmul.f32 %v1023_v32, %v1444_v21  ;;  %v1050_v43 = vunpack.c.l.bf16 %v1084_v48  ;;  %v1051_v59 = vunpack.c.h.bf16 %v1084_v48  ;;  %v671_v38 = vld [vmem:[%s1324_s13 + $0x80] sm:$0xff] }
  0xd1   : > { %v829_v16 = vpack.c.bf16 %v799_v62, %v798_v58  ;;  %v796_v17 = vadd.f32 %v764_v39, %v661_v40  ;;  %v797_v1 = vadd.f32 %v765_v3, %v662_v2  ;;  %v778_v22 = vmul.f32 %v1054_v33, %v1444_v21  ;;  %v655_v33 = vld [vmem:[%s1324_s13] sm:$0xff]  ;;  %v672_v39 = vld [vmem:[%s1324_s13 + $0x88] sm:$0xff] }
  0xd2   : > { %v837_v23 = vpack.c.bf16 %v815_v46, %v814_v0  ;;  %v812_v54 = vadd.f32 %v780_v44, %v677_v34  ;;  %v813_v6 = vadd.f32 %v781_v9, %v678_v8  ;;  %v779_v24 = vmul.f32 %v1055_v45, %v1444_v21 }
  0xd3   : > { %v1014_v50 = vunpack.c.l.bf16 %v1013_v14  ;;  %v1015_v25 = vunpack.c.h.bf16 %v1013_v14  ;;  %844 = vmatpush.bf16.msra.mxu2 %v829_v16  ;;  %v794_v20 = vadd.f32 %v762_v41, %v659_v49  ;;  %v795_v51 = vadd.f32 %v763_v63, %v660_v4  ;;  %v822_v49 = vld [vmem:[#allocation2] sm:$0x3] }
  0xd4   : > { %857 = vmatpush.bf16.msra.mxu3 %v837_v23  ;;  %v760_v36 = vmul.f32 %v1018_v18, %v1444_v21  ;;  %v1046_v26 = vunpack.c.l.bf16 %v1083_v5  ;;  %v810_v52 = vadd.f32 %v778_v22, %v675_v7  ;;  %v811_v27 = vadd.f32 %v779_v24, %v676_v47 }
  0xd5   : > { %v761_v10 = vmul.f32 %v1019_v15, %v1444_v21  ;;  %v776_v13 = vmul.f32 %v1050_v43, %v1444_v21  ;;  %v828_v19 = vpack.c.bf16 %v797_v1, %v796_v17  ;;  %v836_v28 = vpack.c.bf16 %v813_v6, %v812_v54 }
  0xd6   : > { %v777_v11 = vmul.f32 %v1051_v59, %v1444_v21  ;;  %v1047_v60 = vunpack.c.h.bf16 %v1083_v5  ;;  %v827_v30 = vpack.c.bf16 %v795_v51, %v794_v20  ;;  %v792_v57 = vadd.f32 %v760_v36, %v657_v55 }
  0xd7   : > { %845 = vmatpush.bf16.msra.mxu2 %v828_v19  ;;  %v835_v31 = vpack.c.bf16 %v811_v27, %v810_v52  ;;  %v793_v37 = vadd.f32 %v761_v10, %v658_v53  ;;  %v808_v58 = vadd.f32 %v776_v13, %v673_v29  ;;  %v758_v61 = vmul.f32 %v1014_v50, %v1444_v21 }
  0xd8   : > { %858 = vmatpush.bf16.msra.mxu3 %v836_v28  ;;  %v809_v32 = vadd.f32 %v777_v11, %v674_v12  ;;  %v759_v42 = vmul.f32 %v1015_v25, %v1444_v21  ;;  %v774_v56 = vmul.f32 %v1046_v26, %v1444_v21  ;;  %v775_v62 = vmul.f32 %v1047_v60, %v1444_v21  ;;  %v617_v21 = vld [vmem:[%s508_s15] sm:$0x3] }
  0xd9   : > { %v826_v48 = vpack.c.bf16 %v793_v37, %v792_v57  ;;  %v790_v0 = vadd.f32 %v758_v61, %v655_v33  ;;  %v619_v34 = vperm.slane %v617_v21, 0  ;;  %v620_v8 = vperm.slane %v617_v21, 1 }
  0xda   : > { %v834_v40 = vpack.c.bf16 %v809_v32, %v808_v58  ;;  %v791_v2 = vadd.f32 %v759_v42, %v656_v35  ;;  %v806_v3 = vadd.f32 %v774_v56, %v671_v38  ;;  %v807_v44 = vadd.f32 %v775_v62, %v672_v39 }
  0xdb   : > { %846 = vmatpush.bf16.msra.mxu2 %v827_v30 }
  0xdc   : > { %859 = vmatpush.bf16.msra.mxu3 %v835_v31  ;;  %v825_v45 = vpack.c.bf16 %v791_v2, %v790_v0  ;;  %v833_v46 = vpack.c.bf16 %v807_v44, %v806_v3 }
  0xdf   : > { %847 = vmatpush.bf16.msra.mxu2 %v826_v48 }
  0xe0   : > { %860 = vmatpush.bf16.msra.mxu3 %v834_v40 }
  0xe3   : > { %848 = vmatpush.bf16.msra.mxu2 %v825_v45 }
  0xe4   : > { %861 = vmatpush.bf16.msra.mxu3 %v833_v46 }
 0x14a   : > { %v636_v9 = vpop.f32.mrf.mxu0  ;;  %v649_v18 = vpop.f32.mrf.mxu1 }
 0x14b   : > { %v637_v15 = vadd.f32 %v636_v9, %v619_v34  ;;  %v650_v41 = vadd.f32 %v649_v18, %v620_v8 }
 0x14d   : > { %v653_v63 = vmax.f32 %v637_v15, 0.0  ;;  %v654_v43 = vmax.f32 %v650_v41, 0.0 }
 0x14f   : > { %v823_v59 = vpack.c.bf16 %v653_v63, %v653_v63  ;;  %v824_v14 = vpack.c.bf16 %v654_v43, %v654_v43 }
 0x151   : > { %849 = vmatmul.bf16.vlgmr.msra.gmra.mxu2 %v823_v59  ;;  %862 = vmatmul.bf16.vlgmr.msra.gmra.mxu3 %v824_v14 }
 0x152   : > { %v638_v16 = vpop.f32.mrf.mxu0  ;;  %v651_v17 = vpop.f32.mrf.mxu1 }
 0x1d4   : > { %v850_v1 = vpop.f32.mrf.mxu2  ;;  %v863_v4 = vpop.f32.mrf.mxu3 }
 0x1d5   : > { %v864_v22 = vadd.f32 %v863_v4, %v850_v1 }
 0x1d7   : > { %v867_v5 = vadd.f32 %v864_v22, %v822_v49 }
 0x1d8   : > { %872 = sbr.rel (%p1005_p11) target bundleno = 484 (0x1e4), region = 125 }
 0x1d9   : > { %868 = vst [vmem:[#allocation2] sm:$0x3] %v867_v5 }
 0x1dc   : > { %v852_v23 = vpop.f32.mrf.mxu2  ;;  %v865_v54 = vpop.f32.mrf.mxu3 }
 0x1dd   : > { %v1127_v7 = vld [vmem:[%s1602_s6] ss:$0 sm:$0xff] }
 0x1e0   : > { %v873_v6 = vld [vmem:[#allocation2] sm:$0x3] }
 0x1e1   : > { %v878_v47 = vadd.f32 %v1127_v7, %v873_v6 }
 0x1e3   : > { %879 = vst [vmem:[#allocation7] sm:$0x3] %v878_v47 }
 0x1e4 PF: > { %p1095_p12 = scmp.eq.s32.totalorder %s1259_s7, 1  ;;  %s1186_s22 = smov [#allocation7]  }
 0x1e5   : > { %s886_s23 = sshll.u32 %s1186_s22, 4  ;;  %s888_s25 = sshll.u32 %s1604_s9, 4  ;;  %s887_s23 = int_to_ptr.vmem [resolvable:$true] %s886_s23  ;;  %s889_s25 = int_to_ptr.hbm [resolvable:$true] %s888_s25 }
 0x1e6   : > { %1092 = dma.vmem_to_hbm [thread:$0]  (%p1095_p12), %s887_s23, 32, %s889_s25, [#allocation8]  }
 0x1e7   : > { %1169 = dma.done.wait (%p1095_p12), [#allocation8], 32  }
 0x1e8   : > { %1171 = vsyncadd (%p1095_p12), [#allocation8], 4294967264 }
 0x1e9 PF: > { %p21_p13 = scmp.ge.s32.totalorder %s1262_s8, 4   ;;  %s1611_s13 = smov %s1178_s14 }
 0x1ea   : > { %s1612_s14 = smov %s1271_s18  ;;  %s1613_s15 = smov %s1262_s8 }
 0x1eb   :  { %23 = sbr.rel (!%p21_p13) target bundleno = 6 (0x6), region = 174 }
 0x1f0   :  { %902 = vsyncpa [#allocation8], 1 }
 0x1f1   :  { %904 = vsyncpa [#allocation8 + $0x1], 1 }

</bundles_post_ra>
